<compile_context>
chip_gen: v7x
topology: tpu7x:2x2x1
jax: 0.10.0
libtpu: 0.0.40
codegen_flags: <defaults>
</compile_context>

<pallas_src>
import jax
import jax.numpy as jnp
from jax.experimental import pallas as pl
from jax.experimental.pallas import tpu as pltpu


def _round_up(x, m):
    return -(-x // m) * m


def _row_col_of_lane(lane_idx, n):
    """Split a flat lane index into (row, col) for row-major (n x n) tiles."""
    if (n & (n - 1)) == 0:                       # power of two: shifts/ands only
        shift = n.bit_length() - 1
        return lane_idx >> shift, lane_idx & (n - 1)
    # TODO(synk): non-power-of-two N falls back to vector integer div/mod.
    return lane_idx // n, lane_idx % n


def _alignment_kernel(xs_ref,      # (2, TB, N, D)  bf16   [0]=query, [1]=corpus
                      adj_ref,     # (2, TB, N, N)  bf16
                      w_ref,       # (D, D)         bf16
                      sizes_ref,   # (TB, 2)        int32  (n_query, n_corpus)
                      score_ref,   # (1, 1, TB)     f32    lane-dense
                      align_ref):  # (TB, N*N)      f32    lane-dense
    _, TB, N, D = xs_ref.shape
    NN = N * N
    f32, bf16 = jnp.float32, jnp.bfloat16

    # ---- Shared linear transform: one stacked bf16 MXU GEMM for all 2*TB graphs.
    #      (A @ X) @ W == A @ (X @ W); X @ W computed once.
    x_all = xs_ref[...].reshape(2 * TB * N, D)                         # bf16
    xw = jnp.dot(x_all, w_ref[...], preferred_element_type=f32)        # (2*TB*N, D)
    xw = xw.astype(bf16).reshape(2 * TB, N, D)

    # ---- Message passing h = relu(A @ (X W)); bf16 operands, f32 accumulation.
    a_all = adj_ref[...].reshape(2 * TB, N, N)                         # bf16 (0/1 exact)
    h = jax.lax.dot_general(a_all, xw,
                            dimension_numbers=(((2,), (1,)), ((0,), (0,))),
                            preferred_element_type=f32)                # (2*TB, N, D)
    h = jnp.maximum(h, 0.0).astype(bf16)
    hq, hc = h[:TB], h[TB:]

    # ---- Pairwise node similarity: contract the feature dims directly
    #      (no explicit transpose of hc); bf16 in, f32 accumulation.
    s3 = jax.lax.dot_general(hq, hc,
                             dimension_numbers=(((2,), (2,)), ((0,), (0,))),
                             preferred_element_type=f32)               # (TB, N, N)

    # ---- Vectorized validity info from the (TB, 2) sizes block.
    sizes = sizes_ref[...]
    nq = sizes[:, 0:1]                                                 # (TB, 1)
    nc = sizes[:, 1:2]                                                 # (TB, 1)

    # Column mask + exact per-row max stay on the narrow (TB, N, N) path (cheap
    # compares + one XLU reduce); everything heavy below is lane-dense.
    col3 = jax.lax.broadcasted_iota(jnp.int32, (TB, N, N), 2)
    s_m3 = jnp.where(col3 < nc[:, :, None], s3, -1e30)
    m3 = jnp.max(s_m3, axis=-1, keepdims=True)                         # (TB, N, 1)
    shifted = (s_m3 - m3).reshape(TB, NN)                              # lane-dense, <= 0
    m_seg = m3.reshape(TB, N)                                          # (TB, N)

    # ---- Lane-dense epilogue (full 128-lane occupancy on 256-wide rows).
    p = jnp.exp(shifted)                                               # EUP, lane-dense

    # Per-query-row segment sum / spread as tiny MXU matmuls.
    lane_a = jax.lax.broadcasted_iota(jnp.int32, (NN, N), 0)
    row_a = jax.lax.broadcasted_iota(jnp.int32, (NN, N), 1)
    seg_a, _ = _row_col_of_lane(lane_a, N)
    seg_sum = (seg_a == row_a).astype(f32)                             # (NN, N)

    row_b = jax.lax.broadcasted_iota(jnp.int32, (N, NN), 0)
    lane_b = jax.lax.broadcasted_iota(jnp.int32, (N, NN), 1)
    seg_b, _ = _row_col_of_lane(lane_b, N)
    spread = (seg_b == row_b).astype(f32)                              # (N, NN)

    denom = jnp.dot(p, seg_sum, preferred_element_type=f32)            # (TB, N)
    inv_denom = pl.reciprocal(denom, approx=False)                     # exact: rows sum to 1
    invd_spread = jnp.dot(inv_denom, spread, preferred_element_type=f32)   # (TB, NN)
    m_spread = jnp.dot(m_seg, spread, preferred_element_type=f32)          # (TB, NN)

    # (query-row, corpus-col) validity, lane-dense.
    lane = jax.lax.broadcasted_iota(jnp.int32, (TB, NN), 1)
    row_l, col_l = _row_col_of_lane(lane, N)
    valid = (row_l < nq) & (col_l < nc)                                # (TB, NN)

    align = jnp.where(valid, p * invd_spread, 0.0)                     # (TB, NN)
    # align * s, reconstructing s = shifted + m on valid lanes (align == 0 elsewhere;
    # m_spread is only used linearly, so the huge mask value never reaches exp).
    contrib = align * (shifted + m_spread)
    scores = jnp.sum(contrib, axis=-1)                                 # (TB,)

    align_ref[...] = align.astype(align_ref.dtype)
    score_ref[...] = scores.reshape(1, 1, TB).astype(score_ref.dtype)


def forward_with_alignment(x_query, adj_query, x_corpus, adj_corpus, w, graph_sizes,
                           *, block_pairs=128, compute_dtype=jnp.bfloat16):
    """Canonical AlignmentModel.forward_with_alignment -> (scores[B], alignment[B,N,N])."""
    B, N, D = x_query.shape
    NN = N * N

    # Graph pairs per grid step: multiple of 8 (sublane tile), capped by the
    # (padded) batch.  TB=128 amortizes the ~600-cycle per-step overhead and the
    # double-buffered VMEM footprint stays at a few MiB (fits v7x's 64 MiB).
    TB = max(8, min(_round_up(block_pairs, 8), _round_up(B, 8)))
    B_pad = _round_up(B, TB)
    G = B_pad // TB
    pad = B_pad - B

    def prep(a, dtype):
        a = a.astype(dtype)
        if pad:
            a = jnp.pad(a, ((0, pad),) + ((0, 0),) * (a.ndim - 1))
        return a

    # Stack query/corpus along a new leading axis in HBM: no in-kernel concat.
    xs = jnp.stack([prep(x_query, compute_dtype), prep(x_corpus, compute_dtype)], axis=0)
    adjs = jnp.stack([prep(adj_query, compute_dtype), prep(adj_corpus, compute_dtype)], axis=0)
    sizes = prep(graph_sizes.astype(jnp.int32), jnp.int32)     # padded pairs -> size 0
    wc = w.astype(compute_dtype)

    grid_spec = pltpu.PrefetchScalarGridSpec(
        num_scalar_prefetch=0,
        grid=(G,),
        in_specs=[
            pl.BlockSpec((2, TB, N, D), lambda b: (0, b, 0, 0)),
            pl.BlockSpec((2, TB, N, N), lambda b: (0, b, 0, 0)),
            pl.BlockSpec((D, D), lambda b: (0, 0)),
            pl.BlockSpec((TB, 2), lambda b: (b, 0)),
        ],
        out_specs=[
            pl.BlockSpec((1, 1, TB), lambda b: (b, 0, 0)),      # lane-dense scores
            pl.BlockSpec((TB, NN), lambda b: (b, 0)),           # lane-dense alignment
        ],
    )
    scores, align = pl.pallas_call(
        _alignment_kernel,
        out_shape=(jax.ShapeDtypeStruct((G, 1, TB), jnp.float32),
                   jax.ShapeDtypeStruct((B_pad, NN), jnp.float32)),
        grid_spec=grid_spec,
        compiler_params=pltpu.CompilerParams(
            dimension_semantics=("parallel",),
            vmem_limit_bytes=32 * 1024 * 1024),
    )(xs, adjs, wc, sizes)
    return scores.reshape(B_pad)[:B], align[:B].reshape(B, N, N)


def forward(x_query, adj_query, x_corpus, adj_corpus, w, graph_sizes):
    """== AlignmentModel.forward: first element of forward_with_alignment."""
    return forward_with_alignment(x_query, adj_query, x_corpus, adj_corpus, w, graph_sizes)[0]


def forward_for_alignment(x_query, adj_query, x_corpus, adj_corpus, w, graph_sizes):
    """== AlignmentModel.forward_for_alignment: second element."""
    return forward_with_alignment(x_query, adj_query, x_corpus, adj_corpus, w, graph_sizes)[1]


def _reference(x_query, adj_query, x_corpus, adj_corpus, w, graph_sizes):
    """Pure-JAX reference for correctness checking."""
    B, N, D = x_query.shape
    hq = jnp.maximum(jnp.einsum('bij,bjd,de->bie', adj_query, x_query, w), 0.0)
    hc = jnp.maximum(jnp.einsum('bij,bjd,de->bie', adj_corpus, x_corpus, w), 0.0)
    s = jnp.einsum('bqd,bkd->bqk', hq, hc)
    row_ids = jnp.arange(N)[None, :, None]
    col_ids = jnp.arange(N)[None, None, :]
    qmask = row_ids < graph_sizes[:, 0][:, None, None]
    cmask = col_ids < graph_sizes[:, 1][:, None, None]
    s_m = jnp.where(cmask, s, -1e30)
    p = jnp.exp(s_m - jnp.max(s_m, axis=-1, keepdims=True))
    align = p / jnp.sum(p, axis=-1, keepdims=True)
    align = jnp.where(qmask & cmask, align, 0.0)
    scores = jnp.sum(jnp.where(qmask & cmask, align * s, 0.0), axis=(1, 2))
    return scores, align


if __name__ == "__main__":
    B, N, D = 20, 16, 32
    key = jax.random.PRNGKey(0)
    k1, k2, k3, k4, k5, k6 = jax.random.split(key, 6)

    x_query = jax.random.normal(k1, (B, N, D), dtype=jnp.float32)
    x_corpus = jax.random.normal(k2, (B, N, D), dtype=jnp.float32)

    # Symmetric 0/1 adjacency with self loops (deterministic from the key).
    def make_adj(k):
        a = (jax.random.uniform(k, (B, N, N)) < 0.3).astype(jnp.float32)
        a = jnp.maximum(a, jnp.transpose(a, (0, 2, 1)))
        return jnp.maximum(a, jnp.eye(N, dtype=jnp.float32)[None])

    adj_query = make_adj(k3)
    adj_corpus = make_adj(k4)

    # Deterministic parameter; scaled so similarity logits stay O(1), keeping the
    # bf16-intermediate vs f32-reference comparison well inside tolerance.
    w = jax.random.normal(k5, (D, D), dtype=jnp.float32) / D

    # graph_sizes[b] = (num valid query nodes, num valid corpus nodes).
    graph_sizes = jax.random.randint(k6, (B, 2), 4, N + 1).astype(jnp.int32)

    # block_pairs=8 here so the small demo batch still exercises a multi-step
    # grid (G=3) and the batch-padding path; the default is 128 for real runs.
    scores, align = forward_with_alignment(
        x_query, adj_query, x_corpus, adj_corpus, w, graph_sizes, block_pairs=8)
    scores = jax.block_until_ready(scores)
    align = jax.block_until_ready(align)

    # Reference on the same bf16-quantized inputs the kernel consumes.
    q = lambda a: a.astype(jnp.bfloat16).astype(jnp.float32)
    ref_scores, ref_align = _reference(
        q(x_query), q(adj_query), q(x_corpus), q(adj_corpus), q(w), graph_sizes)

    assert scores.shape == (B,) and align.shape == (B, N, N)
    # Tolerance accounts for bf16 MXU operands on the intermediate matmuls.
    assert jnp.allclose(scores, ref_scores, rtol=2e-2, atol=2e-2)
    assert jnp.allclose(align, ref_align, rtol=2e-2, atol=2e-2)

    # TODO(synk): the PyTorch template's forward_with_alignment is abstract; the
    # concrete alignment computation above is a canonical instantiation.
    print("KERNEL_OK")
</pallas_src>

<mosaic_0001>
module attributes {stable_mosaic.version = 11 : i64} {
  func.func @_alignment_kernel(%arg0: i32, %arg1: memref<2x8x16x32xbf16, #tpu.memory_space<vmem>>, %arg2: memref<2x8x16x16xbf16, #tpu.memory_space<vmem>>, %arg3: memref<32x32xbf16, #tpu.memory_space<vmem>>, %arg4: memref<8x2xi32, #tpu.memory_space<vmem>>, %arg5: memref<1x1x8xf32, #tpu.memory_space<vmem>>, %arg6: memref<8x256xf32, #tpu.memory_space<vmem>>) attributes {dimension_semantics = [#tpu.dimension_semantics<parallel>], iteration_bounds = array<i64: 3>, scalar_prefetch = 0 : i64, scratch_operands = 0 : i64, tpu.core_type = #tpu.core_type<tc>, window_params = [{transform_indices = @transform_0, window_bounds = array<i64: 2, 8, 16, 32>}, {transform_indices = @transform_1, window_bounds = array<i64: 2, 8, 16, 16>}, {pipeline_mode = #tpu.pipeline_mode<synchronous>, transform_indices = @transform_2, window_bounds = array<i64: 32, 32>}, {transform_indices = @transform_3, window_bounds = array<i64: 8, 2>}, {transform_indices = @transform_4, window_bounds = array<i64: 1, 1, 8>}, {transform_indices = @transform_5, window_bounds = array<i64: 8, 256>}]} {
    %c0 = arith.constant 0 : index
    %c0_0 = arith.constant 0 : index
    %c0_1 = arith.constant 0 : index
    %c0_2 = arith.constant 0 : index
    %0 = vector.load %arg1[%c0, %c0_0, %c0_1, %c0_2] : memref<2x8x16x32xbf16, #tpu.memory_space<vmem>>, vector<2x8x16x32xbf16>
    %1 = vector.shape_cast %0 : vector<2x8x16x32xbf16> to vector<256x32xbf16>
    %c0_3 = arith.constant 0 : index
    %c0_4 = arith.constant 0 : index
    %2 = vector.load %arg3[%c0_3, %c0_4] : memref<32x32xbf16, #tpu.memory_space<vmem>>, vector<32x32xbf16>
    %cst = arith.constant dense<0.000000e+00> : vector<256x32xf32>
    %3 = tpu.matmul %1, %2, %cst {dimension_numbers = #tpu.dot_dimension_numbers<[1], [0], [0], [1], [0, 0, 1, 1], [], []>} : vector<256x32xbf16>, vector<32x32xbf16>, vector<256x32xf32> -> vector<256x32xf32>
    %4 = arith.truncf %3 : vector<256x32xf32> to vector<256x32xbf16>
    %5 = vector.shape_cast %4 : vector<256x32xbf16> to vector<16x16x32xbf16>
    %c0_5 = arith.constant 0 : index
    %c0_6 = arith.constant 0 : index
    %c0_7 = arith.constant 0 : index
    %c0_8 = arith.constant 0 : index
    %6 = vector.load %arg2[%c0_5, %c0_6, %c0_7, %c0_8] : memref<2x8x16x16xbf16, #tpu.memory_space<vmem>>, vector<2x8x16x16xbf16>
    %7 = vector.shape_cast %6 : vector<2x8x16x16xbf16> to vector<16x16x16xbf16>
    %cst_9 = arith.constant dense<0.000000e+00> : vector<16x16x32xf32>
    %8 = tpu.matmul %7, %5, %cst_9 {dimension_numbers = #tpu.dot_dimension_numbers<[2], [1], [1], [2], [0, 0, 0, 1, 1, 2], [0], [0]>} : vector<16x16x16xbf16>, vector<16x16x32xbf16>, vector<16x16x32xf32> -> vector<16x16x32xf32>
    %cst_10 = arith.constant 0.000000e+00 : f32
    %9 = vector.broadcast %cst_10 : f32 to vector<16x16x32xf32>
    %10 = arith.maximumf %8, %9 : vector<16x16x32xf32>
    %11 = arith.truncf %10 : vector<16x16x32xf32> to vector<16x16x32xbf16>
    %12 = vector.extract_strided_slice %11 {offsets = [0, 0, 0], sizes = [8, 16, 32], strides = [1, 1, 1]} : vector<16x16x32xbf16> to vector<8x16x32xbf16>
    %13 = vector.extract_strided_slice %11 {offsets = [8, 0, 0], sizes = [8, 16, 32], strides = [1, 1, 1]} : vector<16x16x32xbf16> to vector<8x16x32xbf16>
    %cst_11 = arith.constant dense<0.000000e+00> : vector<8x16x16xf32>
    %14 = tpu.matmul %12, %13, %cst_11 {dimension_numbers = #tpu.dot_dimension_numbers<[2], [2], [1], [1], [0, 0, 0, 1, 1, 1], [0], [0]>} : vector<8x16x32xbf16>, vector<8x16x32xbf16>, vector<8x16x16xf32> -> vector<8x16x16xf32>
    %c0_12 = arith.constant 0 : index
    %c0_13 = arith.constant 0 : index
    %15 = vector.load %arg4[%c0_12, %c0_13] : memref<8x2xi32, #tpu.memory_space<vmem>>, vector<8x2xi32>
    %16 = vector.extract_strided_slice %15 {offsets = [0, 0], sizes = [8, 1], strides = [1, 1]} : vector<8x2xi32> to vector<8x1xi32>
    %17 = vector.extract_strided_slice %15 {offsets = [0, 1], sizes = [8, 1], strides = [1, 1]} : vector<8x2xi32> to vector<8x1xi32>
    %18 = tpu.iota {dimensions = array<i32: 2>} : vector<8x16x16xi32>
    %19 = vector.shape_cast %17 : vector<8x1xi32> to vector<8x1x1xi32>
    %20 = vector.broadcast %19 : vector<8x1x1xi32> to vector<8x16x16xi32>
    %21 = arith.cmpi slt, %18, %20 : vector<8x16x16xi32>
    %cst_14 = arith.constant -1.000000e+30 : f32
    %22 = vector.broadcast %cst_14 : f32 to vector<8x16x16xf32>
    %23 = arith.select %21, %14, %22 : vector<8x16x16xi1>, vector<8x16x16xf32>
    %cst_15 = arith.constant dense<0xFF800000> : vector<8x16xf32>
    %24 = vector.multi_reduction <maximumf>, %23, %cst_15 [2] : vector<8x16x16xf32> to vector<8x16xf32>
    %25 = vector.shape_cast %24 : vector<8x16xf32> to vector<8x16x1xf32>
    %26 = vector.broadcast %25 : vector<8x16x1xf32> to vector<8x16x16xf32>
    %27 = arith.subf %23, %26 : vector<8x16x16xf32>
    %28 = vector.shape_cast %27 : vector<8x16x16xf32> to vector<8x256xf32>
    %29 = vector.shape_cast %25 : vector<8x16x1xf32> to vector<8x16xf32>
    %30 = math.exp %28 : vector<8x256xf32>
    %31 = tpu.iota {dimensions = array<i32: 0>} : vector<256x16xi32>
    %32 = tpu.iota {dimensions = array<i32: 1>} : vector<256x16xi32>
    %c4_i32 = arith.constant 4 : i32
    %33 = vector.broadcast %c4_i32 : i32 to vector<256x16xi32>
    %34 = arith.shrsi %31, %33 : vector<256x16xi32>
    %35 = arith.cmpi eq, %34, %32 : vector<256x16xi32>
    %36 = arith.extui %35 : vector<256x16xi1> to vector<256x16xi32>
    %37 = arith.sitofp %36 : vector<256x16xi32> to vector<256x16xf32>
    %38 = tpu.iota {dimensions = array<i32: 0>} : vector<16x256xi32>
    %39 = tpu.iota {dimensions = array<i32: 1>} : vector<16x256xi32>
    %c4_i32_16 = arith.constant 4 : i32
    %40 = vector.broadcast %c4_i32_16 : i32 to vector<16x256xi32>
    %41 = arith.shrsi %39, %40 : vector<16x256xi32>
    %42 = arith.cmpi eq, %41, %38 : vector<16x256xi32>
    %43 = arith.extui %42 : vector<16x256xi1> to vector<16x256xi32>
    %44 = arith.sitofp %43 : vector<16x256xi32> to vector<16x256xf32>
    %cst_17 = arith.constant dense<0.000000e+00> : vector<8x16xf32>
    %45 = tpu.matmul %30, %37, %cst_17 {dimension_numbers = #tpu.dot_dimension_numbers<[1], [0], [0], [1], [0, 0, 1, 1], [], []>} : vector<8x256xf32>, vector<256x16xf32>, vector<8x16xf32> -> vector<8x16xf32>
    %46 = tpu.reciprocal %45 : vector<8x16xf32> -> vector<8x16xf32>
    %cst_18 = arith.constant dense<0.000000e+00> : vector<8x256xf32>
    %47 = tpu.matmul %46, %44, %cst_18 {dimension_numbers = #tpu.dot_dimension_numbers<[1], [0], [0], [1], [0, 0, 1, 1], [], []>} : vector<8x16xf32>, vector<16x256xf32>, vector<8x256xf32> -> vector<8x256xf32>
    %cst_19 = arith.constant dense<0.000000e+00> : vector<8x256xf32>
    %48 = tpu.matmul %29, %44, %cst_19 {dimension_numbers = #tpu.dot_dimension_numbers<[1], [0], [0], [1], [0, 0, 1, 1], [], []>} : vector<8x16xf32>, vector<16x256xf32>, vector<8x256xf32> -> vector<8x256xf32>
    %49 = tpu.iota {dimensions = array<i32: 1>} : vector<8x256xi32>
    %c4_i32_20 = arith.constant 4 : i32
    %50 = vector.broadcast %c4_i32_20 : i32 to vector<8x256xi32>
    %51 = arith.shrsi %49, %50 : vector<8x256xi32>
    %c15_i32 = arith.constant 15 : i32
    %52 = vector.broadcast %c15_i32 : i32 to vector<8x256xi32>
    %53 = arith.andi %49, %52 : vector<8x256xi32>
    %54 = vector.broadcast %16 : vector<8x1xi32> to vector<8x256xi32>
    %55 = arith.cmpi slt, %51, %54 : vector<8x256xi32>
    %56 = vector.broadcast %17 : vector<8x1xi32> to vector<8x256xi32>
    %57 = arith.cmpi slt, %53, %56 : vector<8x256xi32>
    %58 = arith.andi %55, %57 : vector<8x256xi1>
    %59 = arith.mulf %30, %47 : vector<8x256xf32>
    %cst_21 = arith.constant 0.000000e+00 : f32
    %60 = vector.broadcast %cst_21 : f32 to vector<8x256xf32>
    %61 = arith.select %58, %59, %60 : vector<8x256xi1>, vector<8x256xf32>
    %62 = arith.addf %28, %48 : vector<8x256xf32>
    %63 = arith.mulf %61, %62 : vector<8x256xf32>
    %cst_22 = arith.constant dense<0.000000e+00> : vector<8xf32>
    %64 = vector.multi_reduction <add>, %63, %cst_22 [1] : vector<8x256xf32> to vector<8xf32>
    %c0_23 = arith.constant 0 : index
    %c0_24 = arith.constant 0 : index
    %65 = vector.load %arg6[%c0_23, %c0_24] : memref<8x256xf32, #tpu.memory_space<vmem>>, vector<8x256xf32>
    tpu.vector_store %arg6[%c0_23, %c0_24], %61 {strides = array<i32>} : memref<8x256xf32, #tpu.memory_space<vmem>>, vector<8x256xf32>,
    %66 = vector.shape_cast %64 : vector<8xf32> to vector<1x1x8xf32>
    %c0_25 = arith.constant 0 : index
    %c0_26 = arith.constant 0 : index
    %c0_27 = arith.constant 0 : index
    %67 = vector.load %arg5[%c0_25, %c0_26, %c0_27] : memref<1x1x8xf32, #tpu.memory_space<vmem>>, vector<1x1x8xf32>
    tpu.vector_store %arg5[%c0_25, %c0_26, %c0_27], %66 {strides = array<i32>} : memref<1x1x8xf32, #tpu.memory_space<vmem>>, vector<1x1x8xf32>,
    return
  }
  func.func @transform_0(%arg0: i32) -> (i32, i32, i32, i32) {
    %c0_i32 = arith.constant 0 : i32
    %c0_i32_0 = arith.constant 0 : i32
    %c0_i32_1 = arith.constant 0 : i32
    %c0_i32_2 = arith.constant 0 : i32
    return %c0_i32, %arg0, %c0_i32_0, %c0_i32_1 : i32, i32, i32, i32
  }
  func.func @transform_1(%arg0: i32) -> (i32, i32, i32, i32) {
    %c0_i32 = arith.constant 0 : i32
    %c0_i32_0 = arith.constant 0 : i32
    %c0_i32_1 = arith.constant 0 : i32
    %c0_i32_2 = arith.constant 0 : i32
    return %c0_i32, %arg0, %c0_i32_0, %c0_i32_1 : i32, i32, i32, i32
  }
  func.func @transform_2(%arg0: i32) -> (i32, i32) {
    %c0_i32 = arith.constant 0 : i32
    %c0_i32_0 = arith.constant 0 : i32
    %c0_i32_1 = arith.constant 0 : i32
    return %c0_i32, %c0_i32_0 : i32, i32
  }
  func.func @transform_3(%arg0: i32) -> (i32, i32) {
    %c0_i32 = arith.constant 0 : i32
    %c0_i32_0 = arith.constant 0 : i32
    return %arg0, %c0_i32 : i32, i32
  }
  func.func @transform_4(%arg0: i32) -> (i32, i32, i32) {
    %c0_i32 = arith.constant 0 : i32
    %c0_i32_0 = arith.constant 0 : i32
    %c0_i32_1 = arith.constant 0 : i32
    return %arg0, %c0_i32, %c0_i32_0 : i32, i32, i32
  }
  func.func @transform_5(%arg0: i32) -> (i32, i32) {
    %c0_i32 = arith.constant 0 : i32
    %c0_i32_0 = arith.constant 0 : i32
    return %arg0, %c0_i32 : i32, i32
  }
}

</mosaic_0001>

<bundles_post_ra>
// kernel: tpu_custom_call.1
= control target key start
LH: loop header
LB: loop body
LE: loop exit
PB: predicated region body
PF: predicated region fallthrough
CT: control target
= control target key end

     0   :  { %11 = vsyncpa [#allocation5], 0  ;;  %s5041_s0 = inlined_call_operand.vmem [shape: bf16[2,24,16,32], index: 0, kind: input, shape index: {}]   ;;  %s5042_s1 = inlined_call_operand.vmem [shape: bf16[2,24,16,16], index: 1, kind: input, shape index: {}]   ;;  %s5043_s2 = inlined_call_operand.vmem [shape: bf16[32,32], index: 2, kind: input, shape index: {}]   ;;  %s5044_s3 = inlined_call_operand.vmem [shape: s32[24,2], index: 3, kind: input, shape index: {}]   ;;  %s5045_s4 = inlined_call_operand.hbm [shape: f32[3,1,8], index: 4, kind: output, shape index: {0}]   ;;  %s5046_s5 = inlined_call_operand.hbm [shape: f32[24,256], index: 5, kind: output, shape index: {1}]  }
   0x1   :  { %13 = vsyncpa [#allocation5 + $0x1], 0 }
   0x2   :  { %14 = vsyncpa [#allocation7], 0 }
   0x3   :  { %16 = vsyncpa [#allocation7 + $0x1], 0  ;;  %s4185_s18 = smov 0   ;;  %s4187_s19 = smov 0  }
   0x4   :  { %s4189_s20 = smov 0   ;;  %s4191_s21 = smov 0  }
   0x5 LB: > { %s4206_s22 = sadd.s32 4294967295, %s4136_s21   ;;  %s3437_s23 = sadd.s32 4294967294, %s4136_s21   ;;  %s4136_s21 = sphi %s4191_s21, %s5081_s21   ;;  %s4132_s20 = sphi %s4189_s20, %s5080_s20   ;;  %s4128_s19 = sphi %s4187_s19, %s5079_s19   ;;  %s4124_s18 = sphi %s4185_s18, %s5078_s18  }
   0x6   : > { %s4210_s24 = sadd.s32 1, %s4136_s21   ;;  %s29_s25 = sadd.s32 1, %s4132_s20 }
   0x7   : > { %s26_s26 = ssub.s32 %s4136_s21, %s4210_s24  ;;  %p36_p0 = scmp.ne.s32.totalorder %s4132_s20, %s4128_s19 }
   0x8   : > { %p27_p1 = scmp.eq.s32.totalorder %s26_s26, 0  ;;  %p37_p2 = scmp.eq.s32.totalorder %s4136_s21, 0 }
   0x9   : > { %p139_p3 = scmp.eq.s32.totalorder %s4206_s22, 2  ;;  %p144_p4 = scmp.ne.s32.totalorder %s4128_s19, %s4124_s18 }
   0xa   : > { %s4222_s27 = scalar_select %p27_p1, %s4132_s20, %s29_s25  }
   0xb   : > { %p4224_p5 = por %p37_p2, %p36_p0  ;;  %p4228_p6 = por %p139_p3, %p36_p0 }
   0xc   : > { %p145_p7 = scmp.eq.s32.totalorder %s3437_s23, 2  ;;  %p3439_p9 = scmp.ge.s32.totalorder %s4136_s21, 3 }
   0xe   : > { %p4232_p8 = por %p145_p7, %p144_p4  ;;  %190 = sbr.rel (%p3439_p9) target bundleno = 45 (0x2d), region = 20 }
  0x15   : > { %193 = sbr.rel (!%p4224_p5) target bundleno = 33 (0x21), region = 24  ;;  %s195_s6 = sand.u32 (%p4224_p5), 1, %s4132_s20  }
  0x16   : > { %s3612_s7 = sshll.u32 (%p4224_p5), %s4136_s21, 6  ;;  %s3440_s8 = sshll.u32 (%p4224_p5), %s195_s6, 7 }
  0x17   : > { %s4244_s11 = scalar_lea.vmem (%p4224_p5), %s5041_s0, %s3612_s7  ;;  %s197_s12 = scalar_lea.vmem (%p4224_p5), [#allocation2], %s3440_s8 }
  0x18   : > { %v217_v0 = vld [vmem:[%s4244_s11] sm:$0xff] (%p4224_p5)   ;;  %v221_v1 = vld [vmem:[%s4244_s11 + $0x8] sm:$0xff] (%p4224_p5)   ;;  %v225_v2 = vld [vmem:[%s4244_s11 + $0x10] sm:$0xff] (%p4224_p5)  }
  0x19   : > { %218 = vst [vmem:[%s197_s12] sm:$0xff] (%p4224_p5), %v217_v0   ;;  %222 = vst [vmem:[%s197_s12 + $0x8] sm:$0xff] (%p4224_p5), %v221_v1   ;;  %v229_v3 = vld [vmem:[%s4244_s11 + $0x18] sm:$0xff] (%p4224_p5)   ;;  %v233_v4 = vld [vmem:[%s4244_s11 + $0x20] sm:$0xff] (%p4224_p5)  }
  0x1a   : > { %226 = vst [vmem:[%s197_s12 + $0x10] sm:$0xff] (%p4224_p5), %v225_v2   ;;  %v237_v5 = vld [vmem:[%s4244_s11 + $0x28] sm:$0xff] (%p4224_p5)   ;;  %230 = vst [vmem:[%s197_s12 + $0x18] sm:$0xff] (%p4224_p5), %v229_v3   ;;  %v241_v6 = vld [vmem:[%s4244_s11 + $0x30] sm:$0xff] (%p4224_p5)  }
  0x1b   : > { %234 = vst [vmem:[%s197_s12 + $0x20] sm:$0xff] (%p4224_p5), %v233_v4   ;;  %238 = vst [vmem:[%s197_s12 + $0x28] sm:$0xff] (%p4224_p5), %v237_v5   ;;  %v245_v7 = vld [vmem:[%s4244_s11 + $0x38] sm:$0xff] (%p4224_p5)   ;;  %v249_v8 = vld [vmem:[%s4244_s11 + $0xc0] sm:$0xff] (%p4224_p5)  }
  0x1c   : > { %242 = vst [vmem:[%s197_s12 + $0x30] sm:$0xff] %v241_v6   ;;  %246 = vst [vmem:[%s197_s12 + $0x38] sm:$0xff] %v245_v7   ;;  %v253_v9 = vld [vmem:[%s4244_s11 + $0xc8] sm:$0xff]   ;;  %v257_v10 = vld [vmem:[%s4244_s11 + $0xd0] sm:$0xff]  }
  0x1d   : > { %250 = vst [vmem:[%s197_s12 + $0x40] sm:$0xff] %v249_v8   ;;  %v261_v11 = vld [vmem:[%s4244_s11 + $0xd8] sm:$0xff]   ;;  %254 = vst [vmem:[%s197_s12 + $0x48] sm:$0xff] %v253_v9   ;;  %v265_v12 = vld [vmem:[%s4244_s11 + $0xe0] sm:$0xff]  }
  0x1e   : > { %258 = vst [vmem:[%s197_s12 + $0x50] sm:$0xff] %v257_v10   ;;  %262 = vst [vmem:[%s197_s12 + $0x58] sm:$0xff] %v261_v11   ;;  %v269_v13 = vld [vmem:[%s4244_s11 + $0xe8] sm:$0xff]   ;;  %v273_v14 = vld [vmem:[%s4244_s11 + $0xf0] sm:$0xff]  }
  0x1f   : > { %266 = vst [vmem:[%s197_s12 + $0x60] sm:$0xff] %v265_v12   ;;  %270 = vst [vmem:[%s197_s12 + $0x68] sm:$0xff] %v269_v13   ;;  %v277_v15 = vld [vmem:[%s4244_s11 + $0xf8] sm:$0xff]  }
  0x20   : > { %274 = vst [vmem:[%s197_s12 + $0x70] sm:$0xff] %v273_v14   ;;  %278 = vst [vmem:[%s197_s12 + $0x78] sm:$0xff] %v277_v15  }
  0x21 PF: > { %367 = sbr.rel (!%p4224_p5) target bundleno = 45 (0x2d), region = 65  ;;  %s369_s13 = sand.u32 (%p4224_p5), 1, %s4132_s20  }
  0x22   : > { %s3614_s14 = sshll.u32 (%p4224_p5), %s4136_s21, 6  ;;  %s3444_s15 = sshll.u32 (%p4224_p5), %s369_s13, 7 }
  0x23   : > { %s4269_s23 = scalar_lea.vmem (%p4224_p5), %s5042_s1, %s3614_s14  ;;  %s371_s25 = scalar_lea.vmem (%p4224_p5), [#allocation3], %s3444_s15 }
  0x24   : > { %v391_v16 = vld [vmem:[%s4269_s23] sm:$0xff] (%p4224_p5)   ;;  %v395_v17 = vld [vmem:[%s4269_s23 + $0x8] sm:$0xff] (%p4224_p5)   ;;  %v399_v18 = vld [vmem:[%s4269_s23 + $0x10] sm:$0xff] (%p4224_p5)  }
  0x25   : > { %392 = vst [vmem:[%s371_s25] sm:$0xff] (%p4224_p5), %v391_v16   ;;  %396 = vst [vmem:[%s371_s25 + $0x8] sm:$0xff] (%p4224_p5), %v395_v17   ;;  %v403_v19 = vld [vmem:[%s4269_s23 + $0x18] sm:$0xff] (%p4224_p5)   ;;  %v407_v20 = vld [vmem:[%s4269_s23 + $0x20] sm:$0xff] (%p4224_p5)  }
  0x26   : > { %400 = vst [vmem:[%s371_s25 + $0x10] sm:$0xff] (%p4224_p5), %v399_v18   ;;  %v411_v21 = vld [vmem:[%s4269_s23 + $0x28] sm:$0xff] (%p4224_p5)   ;;  %404 = vst [vmem:[%s371_s25 + $0x18] sm:$0xff] (%p4224_p5), %v403_v19   ;;  %v415_v22 = vld [vmem:[%s4269_s23 + $0x30] sm:$0xff] (%p4224_p5)  }
  0x27   : > { %408 = vst [vmem:[%s371_s25 + $0x20] sm:$0xff] (%p4224_p5), %v407_v20   ;;  %412 = vst [vmem:[%s371_s25 + $0x28] sm:$0xff] (%p4224_p5), %v411_v21   ;;  %v419_v23 = vld [vmem:[%s4269_s23 + $0x38] sm:$0xff] (%p4224_p5)   ;;  %v423_v24 = vld [vmem:[%s4269_s23 + $0xc0] sm:$0xff] (%p4224_p5)  }
  0x28   : > { %416 = vst [vmem:[%s371_s25 + $0x30] sm:$0xff] %v415_v22   ;;  %420 = vst [vmem:[%s371_s25 + $0x38] sm:$0xff] %v419_v23   ;;  %v427_v25 = vld [vmem:[%s4269_s23 + $0xc8] sm:$0xff]   ;;  %v431_v26 = vld [vmem:[%s4269_s23 + $0xd0] sm:$0xff]  }
  0x29   : > { %424 = vst [vmem:[%s371_s25 + $0x40] sm:$0xff] %v423_v24   ;;  %v435_v27 = vld [vmem:[%s4269_s23 + $0xd8] sm:$0xff]   ;;  %428 = vst [vmem:[%s371_s25 + $0x48] sm:$0xff] %v427_v25   ;;  %v439_v28 = vld [vmem:[%s4269_s23 + $0xe0] sm:$0xff]  }
  0x2a   : > { %432 = vst [vmem:[%s371_s25 + $0x50] sm:$0xff] %v431_v26   ;;  %436 = vst [vmem:[%s371_s25 + $0x58] sm:$0xff] %v435_v27   ;;  %v443_v29 = vld [vmem:[%s4269_s23 + $0xe8] sm:$0xff]   ;;  %v447_v30 = vld [vmem:[%s4269_s23 + $0xf0] sm:$0xff]  }
  0x2b   : > { %440 = vst [vmem:[%s371_s25 + $0x60] sm:$0xff] %v439_v28   ;;  %444 = vst [vmem:[%s371_s25 + $0x68] sm:$0xff] %v443_v29   ;;  %v451_v31 = vld [vmem:[%s4269_s23 + $0xf8] sm:$0xff]  }
  0x2c   : > { %448 = vst [vmem:[%s371_s25 + $0x70] sm:$0xff] %v447_v30   ;;  %452 = vst [vmem:[%s371_s25 + $0x78] sm:$0xff] %v451_v31  }
  0x2d PF: > { %p3448_p10 = scmp.ge.s32.totalorder %s4136_s21, 1  ;;  %p547_p11 = scmp.lt.s32.totalorder %s4136_s21, 4 }
  0x2f   : > { %p548_p12 = pnand %p3448_p10, %p547_p11 }
  0x30   : > { %v4000_v32 = vld [vmem:[%s5043_s2] sm:$0xff] (!%p548_p12)   ;;  %s4293_s6 = sand.u32 (!%p548_p12), 1, %s4128_s19   ;;  %v4001_v33 = vld [vmem:[%s5043_s2 + $0x8] sm:$0xff] (!%p548_p12)   ;;  %vm735_vm0 = vcmask (!%p548_p12), 261120   ;;  %v4138_v50 = vmov (!%p548_p12), 0.0   ;;  %vm4139_vm1 = vmmov (!%p548_p12), 0  }
  0x31   : > { %551 = sbr.rel (%p548_p12) target bundleno = 1721 (0x6b9), region = 110  ;;  %s3449_s9 = sshll.u32 (!%p548_p12), %s4293_s6, 7  ;;  %3717 = vmatprep.subr.bf16.mxu0 (!%p548_p12), %v4000_v32  ;;  %3759 = vmatprep.subr.bf16.mxu1 (!%p548_p12), %v4138_v50  ;;  %vm998_vm2 = vcmask (!%p548_p12), 130048   ;;  %vm3095_vm11 = vcmask (!%p548_p12), 130112   ;;  %vm3160_vm12 = vcmask (!%p548_p12), 1041409   ;;  %vm3162_vm13 = vcmask (!%p548_p12), 1042434  }
  0x32   : > { %3718 = vmatpush3.bf16.msra.mxu0 (!%p548_p12), %v4000_v32  ;;  %s4299_s10 = scalar_lea.vmem (!%p548_p12), [#allocation2], %s3449_s9  ;;  %s4311_s11 = scalar_lea.vmem (!%p548_p12), [#allocation3], %s3449_s9  ;;  %3761 = vmatprep.mubr.msk.bf16.mxu1 (!%p548_p12), %vm4139_vm1, %v4138_v50  ;;  %vm3164_vm14 = vcmask (!%p548_p12), 1043459   ;;  %vm3166_vm15 = vcmask (!%p548_p12), 1044484  }
  0x33   : > { %v4002_v34 = vld [vmem:[%s4299_s10] sm:$0xff] (!%p548_p12)   ;;  %3719 = vmatprep.subr.bf16.mxu0 (!%p548_p12), %v4001_v33  ;;  %v4003_v35 = vld [vmem:[%s4299_s10 + $0x8] sm:$0xff] (!%p548_p12)   ;;  %v4004_v36 = vld [vmem:[%s4299_s10 + $0x10] sm:$0xff] (!%p548_p12)   ;;  %p602_p13 = scmp.lt.s32.totalorder (!%p548_p12), %s4206_s22, 2  ;;  %s4145_s17 = smov (!%p548_p12), 32  }
  0x34   : > { %3721 = vmatprep.mubr.msk.bf16.mxu0 (!%p548_p12), %vm735_vm0, %v4002_v34  ;;  %v4005_v37 = vld [vmem:[%s4299_s10 + $0x18] sm:$0xff] (!%p548_p12)   ;;  %v4006_v38 = vld [vmem:[%s4299_s10 + $0x20] sm:$0xff] (!%p548_p12)   ;;  %v4007_v39 = vld [vmem:[%s4299_s10 + $0x28] sm:$0xff] (!%p548_p12)   ;;  %s4146_s23 = smov (!%p548_p12), 16   ;;  %s4147_s25 = smov (!%p548_p12), 48  }
  0x35   : > { %v4008_v40 = vld [vmem:[%s4299_s10 + $0x30] sm:$0xff] (!%p548_p12)   ;;  %v4009_v41 = vld [vmem:[%s4299_s10 + $0x38] sm:$0xff] (!%p548_p12)   ;;  %v4010_v42 = vld [vmem:[%s4299_s10 + $0x40] sm:$0xff] (!%p548_p12)   ;;  %s4149_s26 = smov (!%p548_p12), 64   ;;  %s4150_s28 = smov (!%p548_p12), 80  }
  0x36   : > { %3720 = vmatpush3.bf16.msra.mxu0 (!%p548_p12), %v4001_v33  ;;  %v4011_v43 = vld [vmem:[%s4299_s10 + $0x48] sm:$0xff] (!%p548_p12)   ;;  %v4012_v44 = vld [vmem:[%s4299_s10 + $0x50] sm:$0xff] (!%p548_p12)   ;;  %v4013_v45 = vld [vmem:[%s4299_s10 + $0x58] sm:$0xff] (!%p548_p12)   ;;  %s4151_s7 = smov (!%p548_p12), 96   ;;  %s4152_s8 = smov (!%p548_p12), 112  }
  0x37   : > { %v4014_v46 = vld [vmem:[%s4299_s10 + $0x60] sm:$0xff] (!%p548_p12)   ;;  %v4015_v47 = vld [vmem:[%s4299_s10 + $0x68] sm:$0xff] (!%p548_p12)   ;;  %v4016_v48 = vld [vmem:[%s4299_s10 + $0x70] sm:$0xff] (!%p548_p12)   ;;  %3753 = vmatprep.subr.bf16.mxu0 (!%p548_p12), %v4138_v50  ;;  %s3451_s9 = sshll.u32 (!%p548_p12), %s4293_s6, 4 }
  0x38   : > { %v4017_v49 = vld [vmem:[%s4299_s10 + $0x78] sm:$0xff]   ;;  %v4018_v57 = vld [vmem:[%s4311_s11 + $0x8] sm:$0xff]   ;;  %v4021_v58 = vld [vmem:[%s4311_s11] sm:$0xff]   ;;  %s603_s12 = scalar_select %p602_p13, %s4206_s22, 2 }
  0x39   : > { %3722 = vmatmul.mubr.msk.bf16.vlgmr.msra.gmra.mrb[0].mxu0 %vm735_vm0, %v4003_v35  ;;  %v4019_v1 = vld [vmem:[%s4311_s11 + $0x10] sm:$0xff]   ;;  %v4020_v8 = vld [vmem:[%s4311_s11 + $0x18] sm:$0xff]   ;;  %v4022_v15 = vld [vmem:[%s4311_s11 + $0x20] sm:$0xff]   ;;  %s599_s10 = scalar_lea.vmem [#allocation6], %s3451_s9 }
  0x3a   : > { %3725 = vmatprep.mubr.msk.bf16.mxu0 %vm735_vm0, %v4004_v36  ;;  %v4023_v22 = vld [vmem:[%s4311_s11 + $0x48] sm:$0xff]   ;;  %v4025_v30 = vld [vmem:[%s4311_s11 + $0x58] sm:$0xff]   ;;  %v4026_v31 = vld [vmem:[%s4311_s11 + $0x30] sm:$0xff]   ;;  %s3452_s13 = sshll.u32 %s603_s12, 3  ;;  %s3314_s12 = sshll.u32 %s599_s10, 4  ;;  %s3315_s12 = int_to_ptr.vmem [resolvable:$true] %s3314_s12 }
  0x3b   : > { %v4024_v23 = vld [vmem:[%s4311_s11 + $0x28] sm:$0xff]   ;;  %s4431_s16 = scalar_lea.vmem %s5044_s3, %s3452_s13 }
  0x41   : > { %3726 = vmatmul.mubr.msk.bf16.gmra.mrb[4].mxu0 %vm735_vm0, %v4005_v37 }
  0x42   : > { %3729 = vmatprep.mubr.msk.bf16.mxu0 %vm735_vm0, %v4006_v38  ;;  %v4027_v38 = vld [vmem:[%s4311_s11 + $0x68] sm:$0xff]  }
  0x49   : > { %3730 = vmatmul.mubr.msk.bf16.gmra.mrb[8].mxu0 %vm735_vm0, %v4007_v39  ;;  %v4028_v39 = vld [vmem:[%s4311_s11 + $0x38] sm:$0xff]  }
  0x4a   : > { %3733 = vmatprep.mubr.msk.bf16.mxu0 %vm735_vm0, %v4008_v40 }
  0x51   : > { %3734 = vmatmul.mubr.msk.bf16.gmra.mrb[12].mxu0 %vm735_vm0, %v4009_v41 }
  0x52   : > { %3737 = vmatprep.mubr.msk.bf16.mxu0 %vm735_vm0, %v4010_v42 }
  0x59   : > { %3738 = vmatmul.mubr.msk.bf16.gmra.mrb[16].mxu0 %vm735_vm0, %v4011_v43 }
  0x5a   : > { %3741 = vmatprep.mubr.msk.bf16.mxu0 %vm735_vm0, %v4012_v44 }
  0x61   : > { %3742 = vmatmul.mubr.msk.bf16.gmra.mrb[20].mxu0 %vm735_vm0, %v4013_v45  ;;  %v4029_v45 = vld [vmem:[%s4311_s11 + $0x78] sm:$0xff]  }
  0x62   : > { %3745 = vmatprep.mubr.msk.bf16.mxu0 %vm735_vm0, %v4014_v46 }
  0x69   : > { %3746 = vmatmul.mubr.msk.bf16.gmra.mrb[24].mxu0 %vm735_vm0, %v4015_v47  ;;  %v4030_v47 = vld [vmem:[%s4311_s11 + $0x40] sm:$0xff]  }
  0x6a   : > { %3749 = vmatprep.mubr.msk.bf16.mxu0 %vm735_vm0, %v4016_v48  ;;  %v4031_v48 = vld [vmem:[%s4311_s11 + $0x50] sm:$0xff]  }
  0x71   : > { %3750 = vmatmul.mubr.msk.bf16.gmra.mrb[28].mxu0 %vm735_vm0, %v4017_v49  ;;  %v4032_v49 = vld [vmem:[%s4311_s11 + $0x60] sm:$0xff]  }
  0x72   : > { %3755 = vmatprep.mubr.msk.bf16.mxu0 %vm4139_vm1, %v4138_v50 }
 0x10c   : > { %v3723_v51 = vpop.f32.mrb[0].mxu0 }
 0x10d   : > { %v818_v52 = vpop.f32.mrb[1].mxu0 }
 0x10e   : > { %v3724_v53 = vpop.f32.mrb[2].mxu0 }
 0x10f   : > { %v946_v54 = vpack.c.bf16 %v3724_v53, %v3723_v51  ;;  %v821_v55 = vpop.f32.mrb[3].mxu0  ;;  %v4033_v51 = vld [vmem:[%s4311_s11 + $0x70] sm:$0xff]   ;;  %v4140_v53 = vmov 1   ;;  %s3615_s11 = sshll.u32 %s4206_s22, 8 }
 0x110   : > { %v945_v56 = vpack.c.bf16 %v821_v55, %v818_v52  ;;  %v2203_v52 = vlaneseq  ;;  %3996 = vset.pattern.permute.xlu0 %v4140_v53  ;;  %3997 = vset.pattern.permute.xlu1 %v4140_v53  ;;  %s4972_s15 = scalar_lea.hbm %s5046_s5, %s3615_s11 }
 0x111   : > { %3760 = vmatpush3.bf16.msra.mxu1 %v946_v54  ;;  %v4141_v54 = vmov 1966171168  }
 0x112   : > { %3754 = vmatpush3.bf16.msra.mxu0 %v945_v56  ;;  %3765 = vmatprep.subr.bf16.mxu1 %v4138_v50  ;;  %v2207_v55 = vunpack.c.l.s4 %v4141_v54  ;;  %v4426_v56 = vshrl.u32 %v2203_v52, 7 }
 0x113   : > { %3807 = vmatprep.subr.bf16.mxu0 %v4138_v50 }
 0x114   : > { %v3727_v59 = vpop.f32.mrb[4].mxu0  ;;  %3762 = vmatmul.mubr.msk.bf16.vlgmr.msra.gmra.mrb[0].mxu1 %vm998_vm2, %v4018_v57  ;;  %v2208_v57 = vunpack.c.0.s8 %v2207_v55 }
 0x115   : > { %v834_v60 = vpop.f32.mrb[5].mxu0  ;;  %3767 = vmatprep.mubr.msk.bf16.mxu1 %vm4139_vm1, %v4138_v50  ;;  %3756 = vmatmul.mubr.msk.bf16.vlgmr.msra.gmra.mrb[32].mxu0 %vm998_vm2, %v4021_v58 }
 0x116   : > { %v3728_v61 = vpop.f32.mrb[6].mxu0  ;;  %3809 = vmatprep.mubr.msk.bf16.mxu0 %vm4139_vm1, %v4138_v50  ;;  %v2211_v58 = vsub.s32 %v2208_v57, %v4426_v56 }
 0x117   : > { %v948_v62 = vpack.c.bf16 %v3728_v61, %v3727_v59  ;;  %v837_v63 = vpop.f32.mrb[7].mxu0  ;;  %v2202_v59 = vld [vmem:[%s4431_s16] sm:$0xff]  ;;  %v2256_v61 = vsub.s32 0, %v4426_v56 }
 0x118   : > { %v947_v0 = vpack.c.bf16 %v837_v63, %v834_v60  ;;  %v2212_v60 = vrot.slane %v2202_v59, %v2211_v58 }
 0x11a   : > { %3766 = vmatpush3.bf16.msra.mxu1 %v947_v0  ;;  %v2228_v63 = vrot.slane %v2212_v60, %v2211_v58  ;;  %v2220_v0 = vcombine.high %v2212_v60, %v2212_v60 }
 0x11b   : > { %3771 = vmatprep.subr.bf16.mxu1 %v4138_v50 }
 0x11c   : > { %v3731_v2 = vpop.f32.mrb[8].mxu0 }
 0x11d   : > { %3768 = vmatmul.mubr.msk.bf16.vlgmr.msra.gmra.mrb[4].mxu1 %vm998_vm2, %v4019_v1  ;;  %v850_v3 = vpop.f32.mrb[9].mxu0 }
 0x11e   : > { %3772 = vmatpush3.bf16.msra.mxu1 %v948_v62  ;;  %3773 = vmatprep.mubr.msk.bf16.mxu1 %vm4139_vm1, %v4138_v50  ;;  %v3732_v4 = vpop.f32.mrb[10].mxu0  ;;  %v2205_v62 = vcombine.high %v2202_v59, %v2202_v59 }
 0x11f   : > { %v950_v5 = vpack.c.bf16 %v3732_v4, %v3731_v2  ;;  %v853_v6 = vpop.f32.mrb[11].mxu0  ;;  %3777 = vmatprep.subr.bf16.mxu1 %v4138_v50  ;;  %v2257_v2 = vrot.slane %v2228_v63, %v2256_v61  ;;  %v2250_v4 = vcombine.high %v2228_v63, %v2228_v63 }
 0x120   : > { %v949_v7 = vpack.c.bf16 %v853_v6, %v850_v3  ;;  %v2219_v1 = vrot.slane %v2205_v62, %v2211_v58  ;;  %v2242_v3 = vrot.slane %v2220_v0, %v2211_v58 }
 0x121   : > { %2287 = vperm.xlu0 %3996, %v2257_v2  }
 0x122   : > { %v2261_v6 = vrot.slane %v2242_v3, %v2256_v61 }
 0x124   : > { %v3735_v9 = vpop.f32.mrb[12].mxu0 }
 0x125   : > { %3774 = vmatmul.mubr.msk.bf16.vlgmr.msra.gmra.mrb[8].mxu1 %vm998_vm2, %v4020_v8  ;;  %v866_v10 = vpop.f32.mrb[13].mxu0  ;;  %v2252_v8 = vcombine.high %v2242_v3, %v2242_v3  ;;  %2290 = vperm.xlu0 %3996, %v2261_v6  }
 0x126   : > { %v3736_v11 = vpop.f32.mrb[14].mxu0  ;;  %3778 = vmatpush3.bf16.msra.mxu1 %v949_v7  ;;  %3779 = vmatprep.mubr.msk.bf16.mxu1 %vm4139_vm1, %v4138_v50  ;;  %v2265_v7 = vrot.slane %v2250_v4, %v2256_v61 }
 0x127   : > { %v952_v12 = vpack.c.bf16 %v3736_v11, %v3735_v9  ;;  %v869_v13 = vpop.f32.mrb[15].mxu0  ;;  %3783 = vmatprep.subr.bf16.mxu1 %v4138_v50  ;;  %v2235_v9 = vrot.slane %v2219_v1, %v2211_v58 }
 0x128   : > { %v951_v14 = vpack.c.bf16 %v869_v13, %v866_v10  ;;  %2293 = vperm.xlu1 %3997, %v2265_v7   ;;  %v2269_v10 = vrot.slane %v2252_v8, %v2256_v61 }
 0x129   : > { %v2251_v13 = vcombine.high %v2235_v9, %v2235_v9 }
 0x12c   : > { %v3739_v16 = vpop.f32.mrb[16].mxu0  ;;  %2296 = vperm.xlu1 %3997, %v2269_v10  }
 0x12d   : > { %v882_v17 = vpop.f32.mrb[17].mxu0  ;;  %3780 = vmatmul.mubr.msk.bf16.vlgmr.msra.gmra.mrb[12].mxu1 %vm998_vm2, %v4022_v15 }
 0x12e   : > { %v3740_v18 = vpop.f32.mrb[18].mxu0  ;;  %3784 = vmatpush3.bf16.msra.mxu1 %v950_v5  ;;  %3785 = vmatprep.mubr.msk.bf16.mxu1 %vm4139_vm1, %v4138_v50  ;;  %v2221_v5 = vcombine.high %v2219_v1, %v2219_v1 }
 0x12f   : > { %v954_v19 = vpack.c.bf16 %v3740_v18, %v3739_v16  ;;  %v885_v20 = vpop.f32.mrb[19].mxu0  ;;  %3789 = vmatprep.subr.bf16.mxu1 %v4138_v50  ;;  %v2281_v16 = vrot.slane %v2251_v13, %v2256_v61 }
 0x130   : > { %v953_v21 = vpack.c.bf16 %v885_v20, %v882_v17  ;;  %v2249_v11 = vrot.slane %v2221_v5, %v2211_v58 }
 0x131   : > { %3808 = vmatpush3.bf16.msra.mxu0 %v954_v19 }
 0x132   : > { %3819 = vmatprep.subr.bf16.mxu0 %v4138_v50  ;;  %v2253_v15 = vcombine.high %v2249_v11, %v2249_v11 }
 0x134   : > { %v3743_v24 = vpop.f32.mrb[20].mxu0  ;;  %3810 = vmatmul.mubr.msk.bf16.vlgmr.msra.gmra.mrb[36].mxu0 %vm998_vm2, %v4023_v22  ;;  %v2285_v17 = vrot.slane %v2253_v15, %v2256_v61 }
 0x135   : > { %v898_v25 = vpop.f32.mrb[21].mxu0  ;;  %3786 = vmatmul.mubr.msk.bf16.vlgmr.msra.gmra.mrb[16].mxu1 %vm998_vm2, %v4024_v23  ;;  %3821 = vmatprep.mubr.msk.bf16.mxu0 %vm4139_vm1, %v4138_v50 }
 0x136   : > { %v3744_v26 = vpop.f32.mrb[22].mxu0  ;;  %3790 = vmatpush3.bf16.msra.mxu1 %v951_v14  ;;  %3791 = vmatprep.mubr.msk.bf16.mxu1 %vm4139_vm1, %v4138_v50  ;;  %v2277_v14 = vrot.slane %v2249_v11, %v2256_v61 }
 0x137   : > { %v956_v27 = vpack.c.bf16 %v3744_v26, %v3743_v24  ;;  %v901_v28 = vpop.f32.mrb[23].mxu0  ;;  %3795 = vmatprep.subr.bf16.mxu1 %v4138_v50 }
 0x138   : > { %v955_v29 = vpack.c.bf16 %v901_v28, %v898_v25  ;;  %2302 = vperm.xlu1 %3997, %v2277_v14  }
 0x139   : > { %3820 = vmatpush3.bf16.msra.mxu0 %v956_v27 }
 0x13a   : > { %3831 = vmatprep.subr.bf16.mxu0 %v4138_v50 }
 0x13c   : > { %v3747_v32 = vpop.f32.mrb[24].mxu0  ;;  %3822 = vmatmul.mubr.msk.bf16.vlgmr.msra.gmra.mrb[40].mxu0 %vm998_vm2, %v4025_v30  ;;  %2308 = vperm.xlu1 %3997, %v2285_v17  }
 0x13d   : > { %v914_v33 = vpop.f32.mrb[25].mxu0  ;;  %3792 = vmatmul.mubr.msk.bf16.vlgmr.msra.gmra.mrb[20].mxu1 %vm998_vm2, %v4026_v31  ;;  %3833 = vmatprep.mubr.msk.bf16.mxu0 %vm4139_vm1, %v4138_v50 }
 0x13e   : > { %v3748_v34 = vpop.f32.mrb[26].mxu0  ;;  %3796 = vmatpush3.bf16.msra.mxu1 %v952_v12  ;;  %3797 = vmatprep.mubr.msk.bf16.mxu1 %vm4139_vm1, %v4138_v50  ;;  %v2273_v12 = vrot.slane %v2235_v9, %v2256_v61 }
 0x13f   : > { %v958_v35 = vpack.c.bf16 %v3748_v34, %v3747_v32  ;;  %v917_v36 = vpop.f32.mrb[27].mxu0  ;;  %3801 = vmatprep.subr.bf16.mxu1 %v4138_v50 }
 0x140   : > { %v957_v37 = vpack.c.bf16 %v917_v36, %v914_v33  ;;  %2299 = vperm.xlu0 %3996, %v2273_v12  }
 0x141   : > { %3832 = vmatpush3.bf16.msra.mxu0 %v958_v35 }
 0x142   : > { %3843 = vmatprep.subr.bf16.mxu0 %v4138_v50 }
 0x144   : > { %v3751_v40 = vpop.f32.mrb[28].mxu0  ;;  %3834 = vmatmul.mubr.msk.bf16.vlgmr.msra.gmra.mrb[44].mxu0 %vm998_vm2, %v4027_v38  ;;  %2305 = vperm.xlu0 %3996, %v2281_v16  }
 0x145   : > { %v930_v41 = vpop.f32.mrb[29].mxu0  ;;  %3798 = vmatmul.mubr.msk.bf16.vlgmr.msra.gmra.mrb[24].mxu1 %vm998_vm2, %v4028_v39  ;;  %3845 = vmatprep.mubr.msk.bf16.mxu0 %vm4139_vm1, %v4138_v50 }
 0x146   : > { %v3752_v42 = vpop.f32.mrb[30].mxu0  ;;  %3802 = vmatpush3.bf16.msra.mxu1 %v953_v21  ;;  %3803 = vmatprep.mubr.msk.bf16.mxu1 %vm4139_vm1, %v4138_v50 }
 0x147   : > { %v960_v43 = vpack.c.bf16 %v3752_v42, %v3751_v40  ;;  %3813 = vmatprep.subr.bf16.mxu1 %v4138_v50  ;;  %v933_v44 = vpop.f32.mrb[31].mxu0 }
 0x148   : > { %v959_v46 = vpack.c.bf16 %v933_v44, %v930_v41 }
 0x149   : > { %3844 = vmatpush3.bf16.msra.mxu0 %v960_v43 }
 0x14a   : > { %3855 = vmatprep.subr.bf16.mxu0 %v4138_v50 }
 0x14c   : > { %3846 = vmatmul.mubr.msk.bf16.vlgmr.msra.gmra.mrb[48].mxu0 %vm998_vm2, %v4029_v45 }
 0x14d   : > { %3804 = vmatmul.mubr.msk.bf16.vlgmr.msra.gmra.mrb[28].mxu1 %vm998_vm2, %v4030_v47  ;;  %3857 = vmatprep.mubr.msk.bf16.mxu0 %vm4139_vm1, %v4138_v50 }
 0x14e   : > { %3814 = vmatpush3.bf16.msra.mxu1 %v955_v29  ;;  %3815 = vmatprep.mubr.msk.bf16.mxu1 %vm4139_vm1, %v4138_v50 }
 0x14f   : > { %3825 = vmatprep.subr.bf16.mxu1 %v4138_v50 }
 0x155   : > { %3816 = vmatmul.mubr.msk.bf16.vlgmr.msra.gmra.mrb[32].mxu1 %vm998_vm2, %v4031_v48 }
 0x156   : > { %3826 = vmatpush3.bf16.msra.mxu1 %v957_v37  ;;  %3827 = vmatprep.mubr.msk.bf16.mxu1 %vm4139_vm1, %v4138_v50 }
 0x157   : > { %3837 = vmatprep.subr.bf16.mxu1 %v4138_v50 }
 0x15d   : > { %3828 = vmatmul.mubr.msk.bf16.vlgmr.msra.gmra.mrb[36].mxu1 %vm998_vm2, %v4032_v49 }
 0x15e   : > { %3838 = vmatpush3.bf16.msra.mxu1 %v959_v46  ;;  %3839 = vmatprep.mubr.msk.bf16.mxu1 %vm4139_vm1, %v4138_v50 }
 0x15f   : > { %3849 = vmatprep.subr.bf16.mxu1 %v4138_v50 }
 0x165   : > { %3840 = vmatmul.mubr.msk.bf16.vlgmr.msra.gmra.mrb[40].mxu1 %vm998_vm2, %v4033_v51 }
 0x166   : > { %3851 = vmatprep.mubr.msk.bf16.mxu1 %vm4139_vm1, %v4138_v50 }
 0x1e7   : > { %v1085_v18 = vpop.f32.mrb[0].mxu1 }
 0x1e8   : > { %v1780_v19 = vmax.f32 %v1085_v18, 0.0  ;;  %v3763_v20 = vpop.f32.mrb[1].mxu1  ;;  %v1036_v21 = vpop.f32.mrb[32].mxu0 }
 0x1e9   : > { %v1088_v22 = vpop.f32.mrb[2].mxu1  ;;  %v1778_v23 = vmax.f32 %v1036_v21, 0.0  ;;  %v3757_v24 = vpop.f32.mrb[33].mxu0 }
 0x1ea   : > { %v1781_v25 = vmax.f32 %v1088_v22, 0.0  ;;  %v3764_v26 = vpop.f32.mrb[3].mxu1  ;;  %v1039_v27 = vpop.f32.mrb[34].mxu0 }
 0x1eb   : > { %v1779_v28 = vmax.f32 %v1039_v27, 0.0  ;;  %v3758_v29 = vpop.f32.mrb[35].mxu0 }
 0x1ec   : > { %v1811_v30 = vpack.c.bf16 %v1781_v25, %v1780_v19 }
 0x1ed   : > { %v4436_v31 = vpack.c.bf16 %v1779_v28, %v1778_v23 }
 0x1f0   : > { %v1134_v32 = vpop.f32.mrb[4].mxu1 }
 0x1f1   : > { %v3769_v33 = vpop.f32.mrb[5].mxu1  ;;  %v1782_v35 = vmax.f32 %v1134_v32, 0.0 }
 0x1f2   : > { %v1137_v34 = vpop.f32.mrb[6].mxu1 }
 0x1f3   : > { %v1783_v36 = vmax.f32 %v1137_v34, 0.0  ;;  %v3770_v37 = vpop.f32.mrb[7].mxu1 }
 0x1f5   : > { %v4438_v38 = vpack.c.bf16 %v1783_v36, %v1782_v35 }
 0x1f8   : > { %v1183_v39 = vpop.f32.mrb[8].mxu1 }
 0x1f9   : > { %v3775_v40 = vpop.f32.mrb[9].mxu1  ;;  %v1784_v42 = vmax.f32 %v1183_v39, 0.0 }
 0x1fa   : > { %v1186_v41 = vpop.f32.mrb[10].mxu1 }
 0x1fb   : > { %v1785_v43 = vmax.f32 %v1186_v41, 0.0  ;;  %v3776_v44 = vpop.f32.mrb[11].mxu1 }
 0x1fd   : > { %v1813_v45 = vpack.c.bf16 %v1785_v43, %v1784_v42 }
 0x200   : > { %v1232_v46 = vpop.f32.mrb[12].mxu1 }
 0x201   : > { %v3781_v47 = vpop.f32.mrb[13].mxu1  ;;  %v1786_v49 = vmax.f32 %v1232_v46, 0.0 }
 0x202   : > { %v1235_v48 = vpop.f32.mrb[14].mxu1 }
 0x203   : > { %v1787_v51 = vmax.f32 %v1235_v48, 0.0  ;;  %v3782_v54 = vpop.f32.mrb[15].mxu1 }
 0x205   : > { %v4440_v55 = vpack.c.bf16 %v1787_v51, %v1786_v49 }
 0x207   : > { %v1477_v57 = vpop.f32.mrb[36].mxu0 }
 0x208   : > { %v1796_v58 = vmax.f32 %v1477_v57, 0.0  ;;  %v3811_v59 = vpop.f32.mrb[37].mxu0  ;;  %v1281_v60 = vpop.f32.mrb[16].mxu1 }
 0x209   : > { %v1480_v61 = vpop.f32.mrb[38].mxu0  ;;  %v3787_v62 = vpop.f32.mrb[17].mxu1  ;;  %v1788_v2 = vmax.f32 %v1281_v60, 0.0 }
 0x20a   : > { %v1797_v63 = vmax.f32 %v1480_v61, 0.0  ;;  %v3812_v0 = vpop.f32.mrb[39].mxu0  ;;  %v1284_v1 = vpop.f32.mrb[18].mxu1 }
 0x20b   : > { %v1789_v3 = vmax.f32 %v1284_v1, 0.0  ;;  %v3788_v4 = vpop.f32.mrb[19].mxu1 }
 0x20c   : > { %v1819_v5 = vpack.c.bf16 %v1797_v63, %v1796_v58 }
 0x20d   : > { %v1815_v6 = vpack.c.bf16 %v1789_v3, %v1788_v2 }
 0x20e   : > { %v1877_v7 = vsel %vm735_vm0, %v1819_v5, 0 }
 0x20f   : > { %v1575_v8 = vpop.f32.mrb[40].mxu0  ;;  %3856 = vmatpush3.bf16.xpose.msra.mxu0 %v1877_v7 }
 0x210   : > { %v1800_v9 = vmax.f32 %v1575_v8, 0.0  ;;  %v3823_v10 = vpop.f32.mrb[41].mxu0  ;;  %3867 = vmatprep.subr.bf16.mxu0 %v4138_v50  ;;  %v1330_v11 = vpop.f32.mrb[20].mxu1 }
 0x211   : > { %v1578_v12 = vpop.f32.mrb[42].mxu0  ;;  %v3793_v13 = vpop.f32.mrb[21].mxu1  ;;  %v1790_v17 = vmax.f32 %v1330_v11, 0.0 }
 0x212   : > { %v1801_v14 = vmax.f32 %v1578_v12, 0.0  ;;  %v3824_v15 = vpop.f32.mrb[43].mxu0  ;;  %v1333_v16 = vpop.f32.mrb[22].mxu1 }
 0x213   : > { %v1791_v18 = vmax.f32 %v1333_v16, 0.0  ;;  %v3794_v19 = vpop.f32.mrb[23].mxu1 }
 0x214   : > { %v1821_v20 = vpack.c.bf16 %v1801_v14, %v1800_v9  ;;  %v2288_v19 = vpop.permute.xlu0 %2287 }
 0x215   : > { %v4444_v21 = vpack.c.bf16 %v1791_v18, %v1790_v17 }
 0x216   : > { %3858 = vmatmul.mubr.msk.bf16.vlgmr.msra.gmra.mrb[52].mxu0 %vm735_vm0, %v1811_v30  ;;  %v1971_v22 = vsel %vm735_vm0, %v1821_v20, 0  ;;  %v4484_v20 = vand.u32 127, %v2203_v52 }
 0x217   : > { %v1673_v23 = vpop.f32.mrb[44].mxu0  ;;  %3868 = vmatpush3.bf16.xpose.msra.mxu0 %v1971_v22  ;;  %3869 = vmatprep.mubr.msk.bf16.mxu0 %vm4139_vm1, %v4138_v50 }
 0x218   : > { %v1804_v24 = vmax.f32 %v1673_v23, 0.0  ;;  %v3835_v25 = vpop.f32.mrb[45].mxu0  ;;  %v1379_v26 = vpop.f32.mrb[24].mxu1  ;;  %3879 = vmatprep.subr.bf16.mxu0 %v4138_v50  ;;  %vm2310_vm6 = vcmp.lt.s32.totalorder %v4484_v20, %v2288_v19 }
 0x219   : > { %v1676_v27 = vpop.f32.mrb[46].mxu0  ;;  %v3799_v28 = vpop.f32.mrb[25].mxu1  ;;  %v1792_v34 = vmax.f32 %v1379_v26, 0.0 }
 0x21a   : > { %v1805_v29 = vmax.f32 %v1676_v27, 0.0  ;;  %v1382_v32 = vpop.f32.mrb[26].mxu1  ;;  %v3836_v33 = vpop.f32.mrb[47].mxu0 }
 0x21b   : > { %v1793_v35 = vmax.f32 %v1382_v32, 0.0  ;;  %v3800_v30 = vpop.f32.mrb[27].mxu1  ;;  %v2291_v22 = vpop.permute.xlu0 %2290 }
 0x21c   : > { %v1823_v36 = vpack.c.bf16 %v1805_v29, %v1804_v24  ;;  %v4486_v23 = vpop.permute.xlu1 %2293  ;;  %vm2311_vm3 = vcmp.lt.s32.totalorder %v4484_v20, %v2291_v22 }
 0x21d   : > { %v1817_v37 = vpack.c.bf16 %v1793_v35, %v1792_v34  ;;  %vm2312_vm8 = vcmp.lt.s32.totalorder %v4484_v20, %v4486_v23 }
 0x21e   : > { %3870 = vmatmul.mubr.msk.bf16.vlgmr.msra.gmra.mrb[56].mxu0 %vm735_vm0, %v1813_v45  ;;  %v2065_v39 = vsel %vm735_vm0, %v1823_v36, 0 }
 0x21f   : > { %v1771_v40 = vpop.f32.mrb[48].mxu0  ;;  %3880 = vmatpush3.bf16.xpose.msra.mxu0 %v2065_v39  ;;  %3881 = vmatprep.mubr.msk.bf16.mxu0 %vm4139_vm1, %v4138_v50 }
 0x220   : > { %v1808_v41 = vmax.f32 %v1771_v40, 0.0  ;;  %v1428_v42 = vpop.f32.mrb[28].mxu1  ;;  %v3847_v43 = vpop.f32.mrb[49].mxu0  ;;  %3891 = vmatprep.subr.bf16.mxu0 %v4138_v50 }
 0x221   : > { %v3805_v44 = vpop.f32.mrb[29].mxu1  ;;  %v1774_v46 = vpop.f32.mrb[50].mxu0  ;;  %v1794_v51 = vmax.f32 %v1428_v42, 0.0 }
 0x222   : > { %v1809_v47 = vmax.f32 %v1774_v46, 0.0  ;;  %v1431_v48 = vpop.f32.mrb[30].mxu1  ;;  %v3848_v49 = vpop.f32.mrb[51].mxu0 }
 0x223   : > { %v1795_v54 = vmax.f32 %v1431_v48, 0.0  ;;  %v3806_v45 = vpop.f32.mrb[31].mxu1  ;;  %v2297_v29 = vpop.permute.xlu1 %2296 }
 0x224   : > { %v1825_v57 = vpack.c.bf16 %v1809_v47, %v1808_v41  ;;  %vm2313_vm4 = vcmp.lt.s32.totalorder %v4484_v20, %v2297_v29 }
 0x225   : > { %v1818_v58 = vpack.c.bf16 %v1795_v54, %v1794_v51 }
 0x226   : > { %3882 = vmatmul.mubr.msk.bf16.vlgmr.msra.gmra.mrb[60].mxu0 %vm735_vm0, %v1815_v6  ;;  %v2159_v59 = vsel %vm735_vm0, %v1825_v57, 0 }
 0x227   : > { %3892 = vmatpush3.bf16.xpose.msra.mxu0 %v2159_v59  ;;  %v1830_v60 = vsel %vm735_vm0, %v1818_v58, 0  ;;  %3893 = vmatprep.mubr.msk.bf16.mxu0 %vm4139_vm1, %v4138_v50  ;;  %v2303_v39 = vpop.permute.xlu1 %2302 }
 0x228   : > { %v1526_v61 = vpop.f32.mrb[32].mxu1  ;;  %3850 = vmatpush3.bf16.xpose.msra.mxu1 %v1830_v60  ;;  %vm2315_vm5 = vcmp.lt.s32.totalorder %v4484_v20, %v2303_v39 }
 0x229   : > { %v3817_v62 = vpop.f32.mrb[33].mxu1  ;;  %3861 = vmatprep.subr.bf16.mxu1 %v4138_v50  ;;  %v1798_v0 = vmax.f32 %v1526_v61, 0.0 }
 0x22a   : > { %v1529_v63 = vpop.f32.mrb[34].mxu1 }
 0x22b   : > { %v1799_v1 = vmax.f32 %v1529_v63, 0.0  ;;  %v3818_v2 = vpop.f32.mrb[35].mxu1  ;;  %v2309_v51 = vpop.permute.xlu1 %2308 }
 0x22c   : > { %vm2317_vm7 = vcmp.lt.s32.totalorder %v4484_v20, %v2309_v51 }
 0x22d   : > { %v1820_v3 = vpack.c.bf16 %v1799_v1, %v1798_v0 }
 0x22e   : > { %3894 = vmatmul.mubr.msk.bf16.vlgmr.msra.gmra.mrb[64].mxu0 %vm735_vm0, %v1817_v37 }
 0x22f   : > { %3852 = vmatmul.mubr.msk.bf16.vlgmr.msra.gmra.mrb[44].mxu1 %vm735_vm0, %v4436_v31  ;;  %v1924_v4 = vsel %vm735_vm0, %v1820_v3, 0  ;;  %3063 = vmatprep.mubr.f32.mxu0 %v4138_v50 }
 0x230   : > { %v1624_v5 = vpop.f32.mrb[36].mxu1  ;;  %3862 = vmatpush3.bf16.xpose.msra.mxu1 %v1924_v4  ;;  %3863 = vmatprep.mubr.msk.bf16.mxu1 %vm4139_vm1, %v4138_v50 }
 0x231   : > { %v3829_v6 = vpop.f32.mrb[37].mxu1  ;;  %3873 = vmatprep.subr.bf16.mxu1 %v4138_v50  ;;  %v1802_v8 = vmax.f32 %v1624_v5, 0.0 }
 0x232   : > { %v1627_v7 = vpop.f32.mrb[38].mxu1 }
 0x233   : > { %v1803_v9 = vmax.f32 %v1627_v7, 0.0  ;;  %v3830_v10 = vpop.f32.mrb[39].mxu1 }
 0x235   : > { %v1822_v11 = vpack.c.bf16 %v1803_v9, %v1802_v8 }
 0x237   : > { %3864 = vmatmul.mubr.msk.bf16.vlgmr.msra.gmra.mrb[48].mxu1 %vm735_vm0, %v4438_v38  ;;  %v2018_v31 = vsel %vm735_vm0, %v1822_v11, 0 }
 0x238   : > { %v1722_v12 = vpop.f32.mrb[40].mxu1  ;;  %3874 = vmatpush3.bf16.xpose.msra.mxu1 %v2018_v31  ;;  %3875 = vmatprep.mubr.msk.bf16.mxu1 %vm4139_vm1, %v4138_v50 }
 0x239   : > { %v3841_v13 = vpop.f32.mrb[41].mxu1  ;;  %3885 = vmatprep.subr.bf16.mxu1 %v4138_v50  ;;  %v1806_v15 = vmax.f32 %v1722_v12, 0.0 }
 0x23a   : > { %v1725_v14 = vpop.f32.mrb[42].mxu1  ;;  %v2300_v13 = vpop.permute.xlu0 %2299 }
 0x23b   : > { %v1807_v16 = vmax.f32 %v1725_v14, 0.0  ;;  %v3842_v17 = vpop.f32.mrb[43].mxu1  ;;  %vm2314_vm9 = vcmp.lt.s32.totalorder %v4484_v20, %v2300_v13 }
 0x23d   : > { %v1824_v18 = vpack.c.bf16 %v1807_v16, %v1806_v15 }
 0x23f   : > { %3876 = vmatmul.mubr.msk.bf16.vlgmr.msra.gmra.mrb[52].mxu1 %vm735_vm0, %v4440_v55  ;;  %v2112_v38 = vsel %vm735_vm0, %v1824_v18, 0 }
 0x240   : > { %3886 = vmatpush3.bf16.xpose.msra.mxu1 %v2112_v38  ;;  %3887 = vmatprep.mubr.msk.bf16.mxu1 %vm4139_vm1, %v4138_v50  ;;  %vm3168_vm1 = vcmask 1045509  }
 0x247   : > { %3888 = vmatmul.mubr.msk.bf16.vlgmr.msra.gmra.mrb[56].mxu1 %vm735_vm0, %v4444_v21 }
 0x2e9   : > { %v1913_v24 = vpop.f32.mrb[52].mxu0 }
 0x2ea   : > { %v4489_v55 = vsel %vm2311_vm3, %v1913_v24, -1e+30  ;;  %v3859_v25 = vpop.f32.mrb[53].mxu0  ;;  %v2306_v24 = vpop.permute.xlu0 %2305 }
 0x2eb   : > { %v1916_v26 = vpop.f32.mrb[54].mxu0  ;;  %v2340_v27 = vsel %vm998_vm2, %v4489_v55, -inf  ;;  %vm2316_vm10 = vcmp.lt.s32.totalorder %v4484_v20, %v2306_v24 }
 0x2ec   : > { %v4493_v28 = vsel %vm2311_vm3, %v1916_v26, -1e+30  ;;  %2341 = vmax.xlane.f32.xlu0 %v2340_v27  ;;  %v3860_v21 = vpop.f32.mrb[55].mxu0  ;;  %vm3170_vm3 = vcmask 1046534  }
 0x2ed   : > { %v2343_v52 = vsel %vm998_vm2, %v4493_v28, -inf }
 0x2ee   : > { %2344 = vmax.xlane.f32.xlu1 %v2343_v52 }
 0x2f1   : > { %v2007_v32 = vpop.f32.mrb[56].mxu0 }
 0x2f2   : > { %v4498_v33 = vsel %vm2313_vm4, %v2007_v32, -1e+30  ;;  %v3871_v34 = vpop.f32.mrb[57].mxu0 }
 0x2f3   : > { %v2010_v35 = vpop.f32.mrb[58].mxu0  ;;  %v2352_v30 = vsel %vm998_vm2, %v4498_v33, -inf }
 0x2f4   : > { %v4502_v36 = vsel %vm2313_vm4, %v2010_v35, -1e+30  ;;  %2353 = vmax.xlane.f32.xlu0 %v2352_v30  ;;  %v3872_v37 = vpop.f32.mrb[59].mxu0  ;;  %v4142_v35 = vmov 0   ;;  %v3090_v30 = vadd.s32 4294967288, %v4484_v20  ;;  %vm3172_vm4 = vcmask 1047559  }
 0x2f5   : > { %v2355_v40 = vsel %vm998_vm2, %v4502_v36, -inf  ;;  %3998 = vset.pattern.permute.xlu0 %v4142_v35  ;;  %v4568_v37 = vsub.s32 %v4484_v20, %v4426_v56 }
 0x2f6   : > { %v4571_v39 = vsub.s32 %v3090_v30, %v4426_v56 }
 0x2f8   : > { %2356 = vmax.xlane.f32.xlu0 %v2355_v40 }
 0x2f9   : > { %v2101_v41 = vpop.f32.mrb[60].mxu0 }
 0x2fa   : > { %v4507_v42 = vsel %vm2315_vm5, %v2101_v41, -1e+30  ;;  %v3883_v43 = vpop.f32.mrb[61].mxu0 }
 0x2fb   : > { %v2104_v44 = vpop.f32.mrb[62].mxu0  ;;  %v2364_v46 = vsel %vm998_vm2, %v4507_v42, -inf }
 0x2fc   : > { %v4511_v47 = vsel %vm2315_vm5, %v2104_v44, -1e+30  ;;  %2365 = vmax.xlane.f32.xlu0 %v2364_v46  ;;  %v3884_v48 = vpop.f32.mrb[63].mxu0 }
 0x2fd   : > { %v2367_v49 = vsel %vm998_vm2, %v4511_v47, -inf }
 0x300   : > { %2368 = vmax.xlane.f32.xlu0 %v2367_v49 }
 0x301   : > { %v2195_v54 = vpop.f32.mrb[64].mxu0 }
 0x302   : > { %v1866_v45 = vpop.f32.mrb[44].mxu1  ;;  %v3895_v57 = vpop.f32.mrb[65].mxu0  ;;  %v4543_v12 = vsel %vm2317_vm7, %v2195_v54, -1e+30 }
 0x303   : > { %v4517_v58 = vsel %vm2310_vm6, %v1866_v45, -1e+30  ;;  %v3853_v59 = vpop.f32.mrb[45].mxu1  ;;  %v2198_v60 = vpop.f32.mrb[66].mxu0  ;;  %v2376_v15 = vsel %vm998_vm2, %v4543_v12, -inf }
 0x304   : > { %v4521_v61 = vsel %vm2317_vm7, %v2198_v60, -1e+30  ;;  %v1869_v62 = vpop.f32.mrb[46].mxu1  ;;  %v3896_v63 = vpop.f32.mrb[67].mxu0  ;;  %v2334_v0 = vsel %vm998_vm2, %v4517_v58, -inf }
 0x305   : > { %2335 = vmax.xlane.f32.xlu1 %v2334_v0  ;;  %v3854_v1 = vpop.f32.mrb[47].mxu1  ;;  %v2379_v2 = vsel %vm998_vm2, %v4521_v61, -inf  ;;  %v4527_v3 = vsel %vm2310_vm6, %v1869_v62, -1e+30 }
 0x306   : > { %2380 = vmax.xlane.f32.xlu0 %v2379_v2  ;;  %v2337_v4 = vsel %vm998_vm2, %v4527_v3, -inf }
 0x30a   : > { %2338 = vmax.xlane.f32.xlu0 %v2337_v4  ;;  %v1960_v5 = vpop.f32.mrb[48].mxu1 }
 0x30b   : > { %v4533_v6 = vsel %vm2312_vm8, %v1960_v5, -1e+30  ;;  %v3865_v7 = vpop.f32.mrb[49].mxu1 }
 0x30c   : > { %v1963_v8 = vpop.f32.mrb[50].mxu1  ;;  %v2346_v9 = vsel %vm998_vm2, %v4533_v6, -inf }
 0x30d   : > { %v4537_v10 = vsel %vm2312_vm8, %v1963_v8, -1e+30  ;;  %2347 = vmax.xlane.f32.xlu1 %v2346_v9  ;;  %v3866_v11 = vpop.f32.mrb[51].mxu1 }
 0x30e   : > { %v2349_v31 = vsel %vm998_vm2, %v4537_v10, -inf }
 0x30f   : > { %2350 = vmax.xlane.f32.xlu0 %v2349_v31  ;;  %v4143_v31 = vmov 1983009808  }
 0x310   : > { %v2401_v13 = vunpack.c.l.s4 %v4143_v31 }
 0x312   : > { %v2054_v14 = vpop.f32.mrb[52].mxu1 }
 0x313   : > { %v4548_v16 = vsel %vm2314_vm9, %v2054_v14, -1e+30  ;;  %2377 = vmax.xlane.f32.xlu0 %v2376_v15  ;;  %v3877_v17 = vpop.f32.mrb[53].mxu1 }
 0x314   : > { %v2057_v18 = vpop.f32.mrb[54].mxu1  ;;  %v2358_v38 = vsel %vm998_vm2, %v4548_v16, -inf }
 0x315   : > { %v4552_v19 = vsel %vm2314_vm9, %v2057_v18, -1e+30  ;;  %2359 = vmax.xlane.f32.xlu1 %v2358_v38  ;;  %v3878_v22 = vpop.f32.mrb[55].mxu1  ;;  %v2402_v18 = vunpack.c.0.s8 %v2401_v13  ;;  %v4144_v38 = vmov 1934713408  }
 0x316   : > { %v2361_v23 = vsel %vm998_vm2, %v4552_v19, -inf  ;;  %v2465_v22 = vunpack.c.l.s4 %v4144_v38 }
 0x318   : > { %v2466_v35 = vunpack.c.0.s8 %v2465_v22 }
 0x319   : > { %2362 = vmax.xlane.f32.xlu1 %v2361_v23 }
 0x31a   : > { %v2148_v25 = vpop.f32.mrb[56].mxu1 }
 0x31b   : > { %v3889_v26 = vpop.f32.mrb[57].mxu1  ;;  %v4561_v32 = vsel %vm2316_vm10, %v2148_v25, -1e+30 }
 0x31c   : > { %v2151_v27 = vpop.f32.mrb[58].mxu1  ;;  %v2370_v34 = vsel %vm998_vm2, %v4561_v32, -inf }
 0x31d   : > { %v4557_v21 = vsel %vm2316_vm10, %v2151_v27, -1e+30  ;;  %v3890_v29 = vpop.f32.mrb[59].mxu1 }
 0x31e   : > { %v2373_v52 = vsel %vm998_vm2, %v4557_v21, -inf }
 0x31f   : > { %2374 = vmax.xlane.f32.xlu1 %v2373_v52 }
 0x323   : > { %2371 = vmax.xlane.f32.xlu1 %v2370_v34  ;;  %v4600_v34 = vsub.s32 %v2402_v18, %v4426_v56 }
 0x379   : > { %v2342_v40 = vpop.xlane.xlu0 %2341 }
 0x37a   : > { %v3100_v43 = vrot.slane %v2342_v40, %v4568_v37  ;;  %v2384_v52 = vsub.f32 %v4489_v55, %v2342_v40 }
 0x37b   : > { %v2345_v41 = vpop.xlane.xlu1 %2344 }
 0x37c   : > { %v3104_v44 = vrot.slane %v2345_v41, %v4571_v39  ;;  %v2385_v30 = vsub.f32 %v4493_v28, %v2345_v41 }
 0x37e   : > { %v3105_v46 = vsel %vm3095_vm11, %v3104_v44, %v3100_v43 }
 0x381   : > { %v2354_v48 = vpop.xlane.xlu0 %2353 }
 0x382   : > { %v3118_v51 = vrot.slane %v2354_v48, %v4568_v37  ;;  %v2388_v25 = vsub.f32 %v4498_v33, %v2354_v48 }
 0x384   : > { %v2415_v40 = vcombine.high %v2384_v52, %v2388_v25 }
 0x385   : > { %v2357_v49 = vpop.xlane.xlu0 %2356 }
 0x386   : > { %v3122_v54 = vrot.slane %v2357_v49, %v4571_v39  ;;  %v2389_v27 = vsub.f32 %v4502_v36, %v2357_v49 }
 0x388   : > { %v3123_v45 = vsel %vm3095_vm11, %v3122_v54, %v3118_v51  ;;  %v2550_v48 = vcombine.low %v2385_v30, %v2389_v27  ;;  %v2551_v41 = vcombine.high %v2385_v30, %v2389_v27  ;;  %v4614_v54 = vsub.s32 %v2466_v35, %v4426_v56 }
 0x389   : > { %v4579_v57 = vpop.xlane.xlu0 %2365 }
 0x38a   : > { %v3136_v60 = vrot.slane %v4579_v57, %v4568_v37 }
 0x38d   : > { %v2369_v59 = vpop.xlane.xlu0 %2368 }
 0x38e   : > { %v3140_v62 = vrot.slane %v2369_v59, %v4571_v39  ;;  %v2393_v49 = vsub.f32 %v4511_v47, %v2369_v59  ;;  %v2558_v59 = vrot.slane %v2550_v48, %v4600_v34 }
 0x390   : > { %v3141_v63 = vsel %vm3095_vm11, %v3140_v62, %v3136_v60 }
 0x392   : > { %v2336_v1 = vpop.xlane.xlu1 %2335 }
 0x393   : > { %v4585_v0 = vpop.xlane.xlu0 %2380  ;;  %v3089_v4 = vrot.slane %v2336_v1, %v4568_v37  ;;  %v2382_v43 = vsub.f32 %v4517_v58, %v2336_v1 }
 0x394   : > { %v2397_v44 = vsub.f32 %v4521_v61, %v4585_v0 }
 0x397   : > { %v2339_v2 = vpop.xlane.xlu0 %2338 }
 0x398   : > { %v3094_v5 = vrot.slane %v2339_v2, %v4571_v39  ;;  %v2383_v58 = vsub.f32 %v4527_v3, %v2339_v2  ;;  %v4620_v3 = vrot.slane %v2415_v40, %v4600_v34 }
 0x39a   : > { %v3096_v7 = vsel %vm3095_vm11, %v3094_v5, %v3089_v4  ;;  %v2348_v9 = vpop.xlane.xlu1 %2347 }
 0x39b   : > { %v3161_v8 = vsel %vm3160_vm12, %v3105_v46, %v3096_v7  ;;  %v3109_v15 = vrot.slane %v2348_v9, %v4568_v37  ;;  %v2386_v29 = vsub.f32 %v4533_v6, %v2348_v9  ;;  %v2414_v46 = vcombine.low %v2384_v52, %v2388_v25 }
 0x39c   : > { %v2351_v11 = vpop.xlane.xlu0 %2350  ;;  %v4626_v9 = vrot.slane %v2551_v41, %v4600_v34 }
 0x39d   : > { %v3113_v14 = vrot.slane %v2351_v11, %v4571_v39  ;;  %v2387_v36 = vsub.f32 %v4537_v10, %v2351_v11  ;;  %v2398_v28 = vcombine.low %v2382_v43, %v2386_v29  ;;  %v2582_v10 = vcombine.low %v2393_v49, %v2397_v44 }
 0x39e   : > { %v2399_v60 = vcombine.high %v2382_v43, %v2386_v29  ;;  %v2422_v1 = vrot.slane %v2414_v46, %v4600_v34  ;;  %v2392_v11 = vsub.f32 %v4507_v42, %v4579_v57 }
 0x39f   : > { %v3114_v17 = vsel %vm3095_vm11, %v3113_v14, %v3109_v15  ;;  %v2534_v4 = vcombine.low %v2383_v58, %v2387_v36  ;;  %v2535_v5 = vcombine.high %v2383_v58, %v2387_v36  ;;  %v2406_v2 = vrot.slane %v2398_v28, %v4600_v34 }
 0x3a0   : > { %v3163_v23 = vsel %vm3162_vm13, %v3114_v17, %v3161_v8  ;;  %v2378_v51 = vpop.xlane.xlu0 %2377  ;;  %v2590_v13 = vrot.slane %v2582_v10, %v4600_v34  ;;  %v3158_v15 = vrot.slane %v4585_v0, %v4571_v39 }
 0x3a1   : > { %v3165_v26 = vsel %vm3164_vm14, %v3123_v45, %v3163_v23  ;;  %v2583_v45 = vcombine.high %v2393_v49, %v2397_v44  ;;  %v2396_v7 = vsub.f32 %v4543_v12, %v2378_v51  ;;  %v4639_v12 = vrot.slane %v2399_v60, %v4600_v34 }
 0x3a2   : > { %v4593_v24 = vpop.xlane.xlu1 %2359  ;;  %v2542_v17 = vrot.slane %v2534_v4, %v4600_v34  ;;  %v4643_v18 = vrot.slane %v2535_v5, %v4600_v34  ;;  %v2462_v57 = vcombine.low %v2406_v2, %v2422_v1  ;;  %v3154_v22 = vrot.slane %v2378_v51, %v4568_v37 }
 0x3a3   : > { %v3127_v55 = vrot.slane %v4593_v24, %v4568_v37  ;;  %v4634_v14 = vrot.slane %v2583_v45, %v4600_v34  ;;  %v2447_v38 = vcombine.high %v2392_v11, %v2396_v7  ;;  %v2463_v29 = vcombine.high %v2406_v2, %v2422_v1 }
 0x3a4   : > { %v2478_v52 = vcombine.low %v4639_v12, %v4620_v3  ;;  %v2390_v35 = vsub.f32 %v4548_v16, %v4593_v24  ;;  %v2598_v43 = vcombine.low %v2542_v17, %v2558_v59  ;;  %v2599_v44 = vcombine.high %v2542_v17, %v2558_v59 }
 0x3a5   : > { %v2615_v40 = vcombine.high %v4643_v18, %v4626_v9  ;;  %v4669_v24 = vsel %vm3095_vm11, %v3158_v15, %v3154_v22  ;;  %v2477_v58 = vrot.slane %v2463_v29, %v4614_v54  ;;  %v4680_v51 = vrot.slane %v2462_v57, %v4614_v54 }
 0x3a6   : > { %v2363_v33 = vpop.xlane.xlu1 %2362  ;;  %v4694_v1 = vrot.slane %v2478_v52, %v4614_v54  ;;  %v4700_v5 = vrot.slane %v2598_v43, %v4614_v54  ;;  %v2752_v29 = vadd.s32 16, %v4426_v56  ;;  %v2753_v43 = vadd.s32 24, %v4426_v56 }
 0x3a7   : > { %v3131_v6 = vrot.slane %v2363_v33, %v4571_v39  ;;  %v2391_v31 = vsub.f32 %v4552_v19, %v2363_v33  ;;  %v2614_v33 = vcombine.low %v4643_v18, %v4626_v9  ;;  %v2758_v22 = vadd.s32 64, %v4426_v56 }
 0x3a8   : > { %v2777_v52 = vadd.s32 216, %v4426_v56 }
 0x3a9   : > { %v3132_v61 = vsel %vm3095_vm11, %v3131_v6, %v3127_v55  ;;  %v4697_v4 = vrot.slane %v2614_v33, %v4614_v54 }
 0x3aa   : > { %v3167_v62 = vsel %vm3166_vm15, %v3132_v61, %v3165_v26  ;;  %v4683_v61 = vrot.slane %v2599_v44, %v4614_v54 }
 0x3ab   : > { %v3169_v47 = vsel %vm3168_vm1, %v3141_v63, %v3167_v62 }
 0x3ac   : > { %v2375_v8 = vpop.xlane.xlu1 %2374 }
 0x3ad   : > { %v2395_v63 = vsub.f32 %v4557_v21, %v2375_v8  ;;  %v2446_v21 = vcombine.low %v2392_v11, %v2396_v7  ;;  %v3149_v30 = vrot.slane %v2375_v8, %v4571_v39  ;;  %v4666_v39 = vrot.slane %v2447_v38, %v4600_v34 }
 0x3af   : > { %v2566_v42 = vcombine.low %v2391_v31, %v2395_v63  ;;  %v2567_v19 = vcombine.high %v2391_v31, %v2395_v63  ;;  %v2454_v16 = vrot.slane %v2446_v21, %v4600_v34  ;;  %v2767_v31 = vadd.s32 136, %v4426_v56 }
 0x3b0   : > { %v2372_v23 = vpop.xlane.xlu1 %2371 }
 0x3b1   : > { %v2574_v25 = vrot.slane %v2566_v42, %v4600_v34  ;;  %v4648_v0 = vrot.slane %v2567_v19, %v4600_v34  ;;  %v2394_v26 = vsub.f32 %v4561_v32, %v2372_v23  ;;  %v3145_v27 = vrot.slane %v2372_v23, %v4568_v37 }
 0x3b2   : > { %v2799_v38 = vshra.s32 %v2767_v31, 4  ;;  %v2782_v23 = vshra.s32 %v4426_v56, 4 }
 0x3b3   : > { %v2631_v46 = vcombine.high %v2574_v25, %v2590_v13  ;;  %v2646_v32 = vcombine.low %v4648_v0, %v4634_v14  ;;  %v2430_v36 = vcombine.low %v2390_v35, %v2394_v26  ;;  %v2431_v55 = vcombine.high %v2390_v35, %v2394_v26 }
 0x3b4   : > { %v3150_v6 = vsel %vm3095_vm11, %v3149_v30, %v3145_v27  ;;  %v2630_v48 = vcombine.low %v2574_v25, %v2590_v13  ;;  %v2647_v59 = vcombine.high %v4648_v0, %v4634_v14  ;;  %v4717_v13 = vadd.s32 8, %v4426_v56 }
 0x3b5   : > { %v2438_v49 = vrot.slane %v2430_v36, %v4600_v34  ;;  %v4673_v28 = vrot.slane %v2431_v55, %v4600_v34  ;;  %v4676_v41 = vsel %vm3170_vm3, %v3150_v6, %v3169_v47  ;;  %v4686_v10 = vrot.slane %v2631_v46, %v4614_v54 }
 0x3b6   : > { %v4691_v62 = vrot.slane %v2646_v32, %v4614_v54  ;;  %v2766_v47 = vadd.s32 128, %v4426_v56  ;;  %v4710_v8 = vrot.slane %v2630_v48, %v4614_v54  ;;  %v2783_v25 = vshra.s32 %v4717_v13, 4 }
 0x3b7   : > { %v2494_v45 = vcombine.low %v2438_v49, %v2454_v16  ;;  %v2495_v60 = vcombine.high %v2438_v49, %v2454_v16  ;;  %v2510_v34 = vcombine.low %v4673_v28, %v4666_v39  ;;  %v2665_v17 = vcombine.high %v4683_v61, %v4686_v10 }
 0x3b8   : > { %v2798_v63 = vshra.s32 %v2766_v47, 4  ;;  %v2666_v42 = vcombine.low %v4697_v4, %v4691_v62  ;;  %v2511_v19 = vcombine.high %v4673_v28, %v4666_v39  ;;  %v2768_v26 = vadd.s32 144, %v4426_v56 }
 0x3b9   : > { %v2509_v2 = vrot.slane %v2495_v60, %v4614_v54  ;;  %v4707_v7 = vrot.slane %v2494_v45, %v4614_v54  ;;  %v4713_v11 = vrot.slane %v2510_v34, %v4614_v54  ;;  %v2769_v27 = vadd.s32 152, %v4426_v56 }
 0x3ba   : > { %vm4732_vm5 = vcmp.eq.s32.totalorder %v2798_v63, %v4484_v20  ;;  %vm4744_vm6 = vcmp.eq.s32.totalorder %v2799_v38, %v4484_v20  ;;  %vm4749_vm7 = vcmp.eq.s32.totalorder %v2782_v23, %v4484_v20  ;;  %vm4754_vm8 = vcmp.eq.s32.totalorder %v2783_v25, %v4484_v20 }
 0x3bb   : > { %v2528_v15 = vcombine.low %v2477_v58, %v2509_v2  ;;  %v2527_v14 = vcombine.high %v4680_v51, %v4707_v7  ;;  %v2529_v57 = vcombine.high %v2477_v58, %v2509_v2  ;;  %v2526_v21 = vcombine.low %v4680_v51, %v4707_v7  ;;  %vm3897_vm9 = vmpackc.low %vm4744_vm6, %vm4732_vm5 }
 0x3bc   : > { %v2530_v0 = vcombine.low %v4694_v1, %v4713_v11  ;;  %v2800_v44 = vshra.s32 %v2768_v26, 4  ;;  %v2801_v33 = vshra.s32 %v2769_v27, 4  ;;  %v2784_v46 = vshra.s32 %v2752_v29, 4  ;;  %vm3899_vm10 = vmpackc.low %vm4754_vm8, %vm4749_vm7 }
 0x3bd   : > { %2675 = vrot.lane.b32.xlu1 %v2528_v15, %s4145_s17  ;;  %2671 = vrot.lane.b32.xlu0 %v2527_v14, %s4146_s23  ;;  %v2662_v32 = vcombine.low %v4700_v5, %v4710_v8  ;;  %v2785_v36 = vshra.s32 %v2753_v43, 4  ;;  %v2770_v55 = vadd.s32 160, %v4426_v56  ;;  %v2771_v6 = vadd.s32 168, %v4426_v56 }
 0x3be   : > { %v2754_v16 = vadd.s32 32, %v4426_v56  ;;  %v4148_v39 = vmov 1.0|1.0   ;;  %vm2832_vm11 = vcmp.eq.s32.totalorder %v2800_v44, %v4484_v20  ;;  %vm2833_vm12 = vcmp.eq.s32.totalorder %v2801_v33, %v4484_v20 }
 0x3bf   : > { %3898 = vmatprep.subr.msk.bf16.mxu1 %vm3897_vm9, %v4148_v39  ;;  %vm4776_vm13 = vcmp.eq.s32.totalorder %v2784_v46, %v4484_v20  ;;  %v2755_v49 = vadd.s32 40, %v4426_v56  ;;  %vm3901_vm14 = vmpackc.low %vm2833_vm12, %vm2832_vm11  ;;  %vm4783_vm15 = vcmp.eq.s32.totalorder %v2785_v36, %v4484_v20  ;;  %v2802_v58 = vshra.s32 %v2770_v55, 4 }
 0x3c0   : > { %3900 = vmatpush3.bf16.msk.msra.mxu1 %vm3899_vm10, %v4148_v39  ;;  %v2803_v45 = vshra.s32 %v2771_v6, 4  ;;  %v2786_v60 = vshra.s32 %v2754_v16, 4  ;;  %v2479_v34 = vcombine.high %v4639_v12, %v4620_v3  ;;  %v4790_v47 = vrot.slane %v2647_v59, %v4614_v54  ;;  %vm3903_vm1 = vmpackc.low %vm4783_vm15, %vm4776_vm13 }
 0x3c1   : > { %2679 = vrot.lane.b32.xlu1 %v2529_v57, %s4147_s25  ;;  %2707 = vrot.lane.b32.xlu0 %v2665_v17, %s4147_s25  ;;  %v2787_v2 = vshra.s32 %v2755_v49, 4  ;;  %v4800_v31 = vsel %vm3172_vm4, %v4669_v24, %v4676_v41  ;;  %vm2834_vm3 = vcmp.eq.s32.totalorder %v2802_v58, %v4484_v20  ;;  %v2531_v24 = vcombine.high %v4694_v1, %v4713_v11 }
 0x3c2   : > { %3902 = vmatprep.subr.msk.bf16.mxu1 %vm3901_vm14, %v4148_v39  ;;  %vm2835_vm5 = vcmp.eq.s32.totalorder %v2803_v45, %v4484_v20  ;;  %vm4805_vm6 = vcmp.eq.s32.totalorder %v2786_v60, %v4484_v20  ;;  %v2667_v41 = vcombine.high %v4697_v4, %v4691_v62  ;;  %v2629_v59 = vrot.slane %v2615_v40, %v4614_v54 }
 0x3c3   : > { %vm3905_vm7 = vmpackc.low %vm2835_vm5, %vm2834_vm3  ;;  %vm4810_vm8 = vcmp.eq.s32.totalorder %v2787_v2, %v4484_v20  ;;  %v4823_v63 = vrot.slane %v2511_v19, %v4614_v54  ;;  %v4827_v15 = vrot.slane %v2479_v34, %v4614_v54  ;;  %v2663_v9 = vcombine.high %v4700_v5, %v4710_v8  ;;  %v4041_v34 = vld [vmem:[%s4431_s16] sm:$0xff]  ;;  %s3287_s16 = scalar_lea.sflag [#allocation7], %s4293_s6 }
 0x3c4   : > { %3904 = vmatpush3.bf16.msk.msra.mxu1 %vm3903_vm1, %v4148_v39  ;;  %vm3907_vm4 = vmpackc.low %vm4810_vm8, %vm4805_vm6  ;;  %v2668_v18 = vcombine.low %v2629_v59, %v4790_v47  ;;  %v2772_v40 = vadd.s32 176, %v4426_v56  ;;  %v2773_v54 = vadd.s32 184, %v4426_v56  ;;  %v2664_v62 = vcombine.low %v4683_v61, %v4686_v10 }
 0x3c5   : > { %2683 = vrot.lane.b32.xlu1 %v2530_v0, %s4149_s26  ;;  %2711 = vrot.lane.b32.xlu0 %v2666_v42, %s4149_s26  ;;  %v2669_v1 = vcombine.high %v2629_v59, %v4790_v47  ;;  %v2756_v4 = vadd.s32 48, %v4426_v56  ;;  %v2757_v11 = vadd.s32 56, %v4426_v56  ;;  %v2532_v14 = vcombine.low %v4827_v15, %v4823_v63 }
 0x3c6   : > { %3906 = vmatprep.subr.msk.bf16.mxu1 %vm3905_vm7, %v4148_v39  ;;  %v2533_v17 = vcombine.high %v4827_v15, %v4823_v63  ;;  %v2804_v42 = vshra.s32 %v2772_v40, 4  ;;  %v2805_v19 = vshra.s32 %v2773_v54, 4  ;;  %v2774_v61 = vadd.s32 192, %v4426_v56 }
 0x3c7   : > { %v2788_v57 = vshra.s32 %v2756_v4, 4  ;;  %v2789_v38 = vshra.s32 %v2757_v11, 4  ;;  %v2775_v10 = vadd.s32 200, %v4426_v56  ;;  %v2759_v23 = vadd.s32 72, %v4426_v56 }
 0x3c8   : > { %3908 = vmatpush3.bf16.msk.msra.mxu1 %vm3907_vm4, %v4148_v39  ;;  %vm2836_vm9 = vcmp.eq.s32.totalorder %v2804_v42, %v4484_v20  ;;  %vm2837_vm10 = vcmp.eq.s32.totalorder %v2805_v19, %v4484_v20  ;;  %v2806_v25 = vshra.s32 %v2774_v61, 4  ;;  %v2790_v26 = vshra.s32 %v2758_v22, 4 }
 0x3c9   : > { %2687 = vrot.lane.b32.xlu1 %v2531_v24, %s4150_s28  ;;  %2715 = vrot.lane.b32.xlu0 %v2667_v41, %s4150_s28  ;;  %vm3909_vm11 = vmpackc.low %vm2837_vm10, %vm2836_vm9  ;;  %vm2820_vm12 = vcmp.eq.s32.totalorder %v2788_v57, %v4484_v20  ;;  %vm2821_vm13 = vcmp.eq.s32.totalorder %v2789_v38, %v4484_v20  ;;  %v2807_v0 = vshra.s32 %v2775_v10, 4  ;;  %v2791_v27 = vshra.s32 %v2759_v23, 4 }
 0x3ca   : > { %3910 = vmatprep.subr.msk.bf16.mxu1 %vm3909_vm11, %v4148_v39  ;;  %vm3911_vm14 = vmpackc.low %vm2821_vm13, %vm2820_vm12  ;;  %v2776_v29 = vadd.s32 208, %v4426_v56  ;;  %vm2838_vm15 = vcmp.eq.s32.totalorder %v2806_v25, %v4484_v20  ;;  %v2760_v35 = vadd.s32 80, %v4426_v56  ;;  %v2761_v30 = vadd.s32 88, %v4426_v56 }
 0x3cb   : > { %vm2839_vm1 = vcmp.eq.s32.totalorder %v2807_v0, %v4484_v20  ;;  %vm2822_vm5 = vcmp.eq.s32.totalorder %v2790_v26, %v4484_v20  ;;  %vm2823_vm6 = vcmp.eq.s32.totalorder %v2791_v27, %v4484_v20  ;;  %v2809_v44 = vshra.s32 %v2777_v52, 4 }
 0x3cc   : > { %3912 = vmatpush3.bf16.msk.msra.mxu1 %vm3911_vm14, %v4148_v39  ;;  %vm3913_vm3 = vmpackc.low %vm2839_vm1, %vm2838_vm15  ;;  %v2808_v43 = vshra.s32 %v2776_v29, 4  ;;  %v2792_v33 = vshra.s32 %v2760_v35, 4  ;;  %v2793_v46 = vshra.s32 %v2761_v30, 4  ;;  %v2778_v36 = vadd.s32 224, %v4426_v56 }
 0x3cd   : > { %2699 = vrot.lane.b32.xlu1 %v2663_v9, %s4146_s23  ;;  %2719 = vrot.lane.b32.xlu0 %v2668_v18, %s4151_s7  ;;  %vm3915_vm7 = vmpackc.low %vm2823_vm6, %vm2822_vm5  ;;  %v2779_v55 = vadd.s32 232, %v4426_v56  ;;  %vm4880_vm4 = vcmp.eq.s32.totalorder %v2809_v44, %v4484_v20  ;;  %v2762_v48 = vadd.s32 96, %v4426_v56  ;;  %v2763_v49 = vadd.s32 104, %v4426_v56  ;;  %s4153_s23 = smov [#allocation6]  }
 0x3ce   : > { %3914 = vmatprep.subr.msk.bf16.mxu1 %vm3913_vm3, %v4148_v39  ;;  %vm4875_vm8 = vcmp.eq.s32.totalorder %v2808_v43, %v4484_v20  ;;  %vm4892_vm10 = vcmp.eq.s32.totalorder %v2792_v33, %v4484_v20  ;;  %vm4897_vm11 = vcmp.eq.s32.totalorder %v2793_v46, %v4484_v20  ;;  %v2810_v45 = vshra.s32 %v2778_v36, 4  ;;  %s4046_s25 = sshll.u32 %s4153_s23, 4  ;;  %s4047_s25 = int_to_ptr.vmem [resolvable:$false] %s4046_s25 }
 0x3cf   : > { %vm3917_vm9 = vmpackc.low %vm4880_vm4, %vm4875_vm8  ;;  %v2811_v60 = vshra.s32 %v2779_v55, 4  ;;  %v2794_v47 = vshra.s32 %v2762_v48, 4  ;;  %v2795_v2 = vshra.s32 %v2763_v49, 4  ;;  %v2780_v3 = vadd.s32 240, %v4426_v56  ;;  %s4048_s26 = scalar_lea.vmem %s4047_s25, 512  ;;  %p4049_p3 = scmp.lt.s32.totalorder %s3315_s12, %s4047_s25 }
 0x3d0   : > { %3916 = vmatpush3.bf16.msk.msra.mxu1 %vm3915_vm7, %v4148_v39  ;;  %vm3919_vm12 = vmpackc.low %vm4897_vm11, %vm4892_vm10  ;;  %v2781_v12 = vadd.s32 248, %v4426_v56  ;;  %vm2842_vm13 = vcmp.eq.s32.totalorder %v2810_v45, %v4484_v20  ;;  %v2764_v24 = vadd.s32 112, %v4426_v56  ;;  %v2765_v41 = vadd.s32 120, %v4426_v56 }
 0x3d1   : > { %2703 = vrot.lane.b32.xlu1 %v2664_v62, %s4145_s17  ;;  %2723 = vrot.lane.b32.xlu0 %v2669_v1, %s4152_s8  ;;  %vm2843_vm14 = vcmp.eq.s32.totalorder %v2811_v60, %v4484_v20  ;;  %vm4915_vm1 = vcmp.eq.s32.totalorder %v2794_v47, %v4484_v20  ;;  %vm4920_vm3 = vcmp.eq.s32.totalorder %v2795_v2, %v4484_v20  ;;  %v2812_v18 = vshra.s32 %v2780_v3, 4  ;;  %s4042_s17 = scalar_lea.vmem %s3315_s12, 256 }
 0x3d2   : > { %3918 = vmatprep.subr.msk.bf16.mxu1 %vm3917_vm9, %v4148_v39  ;;  %vm3921_vm15 = vmpackc.low %vm2843_vm14, %vm2842_vm13  ;;  %v2813_v40 = vshra.s32 %v2781_v12, 4  ;;  %v2796_v54 = vshra.s32 %v2764_v24, 4  ;;  %v2797_v62 = vshra.s32 %v2765_v41, 4  ;;  %vm2728_vm11 = vcmask 392192   ;;  %p4043_p0 = scmp.ne.s32.totalorder %s3315_s12, %s4042_s17  ;;  %p4050_p4 = scmp.lt.s32.totalorder %s4048_s26, %s4042_s17 }
 0x3d3   : > { %vm3923_vm5 = vmpackc.low %vm4920_vm3, %vm4915_vm1  ;;  %vm2844_vm6 = vcmp.eq.s32.totalorder %v2812_v18, %v4484_v20  ;;  %vm2734_vm13 = vcmask 785408   ;;  %vm2732_vm14 = vcmask 654336   ;;  %v2910_v33 = vadd.s32 128, %v4484_v20 }
 0x3d4   : > { %3920 = vmatpush3.bf16.msk.msra.mxu1 %vm3919_vm12, %v4148_v39  ;;  %vm2845_vm7 = vcmp.eq.s32.totalorder %v2813_v40, %v4484_v20  ;;  %vm2828_vm4 = vcmp.eq.s32.totalorder %v2796_v54, %v4484_v20  ;;  %vm2829_vm9 = vcmp.eq.s32.totalorder %v2797_v62, %v4484_v20  ;;  %vm2730_vm12 = vcmask 523264   ;;  %p4044_p1 = pnand %p4043_p0, %p4228_p6  ;;  %p4051_p5 = por %p4050_p4, %p4049_p3 }
 0x3d5   : > { %2691 = vrot.lane.b32.xlu1 %v2532_v14, %s4151_s7  ;;  %3250 = vperm.xlu0 %3998, %v4041_v34   ;;  %vm3925_vm8 = vmpackc.low %vm2845_vm7, %vm2844_vm6  ;;  %v2911_v46 = vshra.s32 %v4484_v20, 4  ;;  %v2912_v36 = vshra.s32 %v2910_v33, 4 }
 0x3d6   : > { %3922 = vmatprep.subr.msk.bf16.mxu1 %vm3921_vm15, %v4148_v39  ;;  %vm3927_vm10 = vmpackc.low %vm2829_vm9, %vm2828_vm4  ;;  %vm2736_vm15 = vcmask 916480   ;;  %p4045_p2 = pneg %p4044_p1 }
 0x3d7   : > { %vm2916_vm1 = vcmp.eq.s32.totalorder %v2912_v36, %v4717_v13  ;;  %vm2913_vm3 = vcmp.eq.s32.totalorder %v2911_v46, %v4426_v56 }
 0x3d8   : > { %3924 = vmatpush3.bf16.msk.msra.mxu1 %vm3923_vm5, %v4148_v39  ;;  %vm2915_vm5 = vcmp.eq.s32.totalorder %v2911_v46, %v4717_v13  ;;  %v3248_v13 = vand.u32 15, %v2910_v33  ;;  %p4052_p7 = pnand %p4051_p5, %p4045_p2 }
 0x3d9   : > { %2695 = vrot.lane.b32.xlu1 %v2533_v17, %s4152_s8  ;;  %3999 = vset.pattern.permute.xlu0 %v4140_v53  ;;  %vm3931_vm7 = vmpackc.low %vm2915_vm5, %vm2913_vm3 }
 0x3da   : > { %3926 = vmatprep.subr.msk.bf16.mxu1 %vm3925_vm8, %v4148_v39 }
 0x3dc   : > { %3928 = vmatpush3.bf16.msk.msra.mxu1 %vm3927_vm10, %v4148_v39 }
 0x3dd   : > { %3255 = vperm.xlu1 %3997, %v4041_v34  }
 0x42f   : > { %v2676_v63 = vpop.permute.xlu1 %2675  ;;  %v2672_v15 = vpop.permute.xlu0 %2671 }
 0x430   : > { %v2726_v61 = vsel %vm998_vm2, %v2526_v21, %v2672_v15 }
 0x431   : > { %v2727_v25 = vsel %vm735_vm0, %v2726_v61, %v2676_v63 }
 0x433   : > { %v2680_v1 = vpop.permute.xlu1 %2679  ;;  %v2708_v4 = vpop.permute.xlu0 %2707 }
 0x437   : > { %v2684_v11 = vpop.permute.xlu1 %2683  ;;  %v2712_v14 = vpop.permute.xlu0 %2711 }
 0x43b   : > { %v2688_v17 = vpop.permute.xlu1 %2687  ;;  %v2716_v42 = vpop.permute.xlu0 %2715 }
 0x43f   : > { %v2700_v19 = vpop.permute.xlu1 %2699  ;;  %v2720_v57 = vpop.permute.xlu0 %2719 }
 0x440   : > { %v2738_v53 = vsel %vm998_vm2, %v2662_v32, %v2700_v19  ;;  %v2729_v32 = vsel %vm2728_vm11, %v2727_v25, %v2680_v1 }
 0x441   : > { %v2731_v27 = vsel %vm2730_vm12, %v2729_v32, %v2684_v11 }
 0x442   : > { %v2733_v7 = vsel %vm2732_vm14, %v2731_v27, %v2688_v17 }
 0x443   : > { %v2704_v38 = vpop.permute.xlu1 %2703  ;;  %v2724_v26 = vpop.permute.xlu0 %2723 }
 0x444   : > { %v2739_v10 = vsel %vm735_vm0, %v2738_v53, %v2704_v38  ;;  %vm2914_vm0 = vcmp.eq.s32.totalorder %v2912_v36, %v4426_v56  ;;  %v3247_v56 = vand.u32 15, %v4484_v20 }
 0x445   : > { %v2740_v22 = vsel %vm2728_vm11, %v2739_v10, %v2708_v4  ;;  %vm3929_vm6 = vmpackc.low %vm2916_vm1, %vm2914_vm0 }
 0x446   : > { %v2741_v23 = vsel %vm2730_vm12, %v2740_v22, %v2712_v14  ;;  %3930 = vmatprep.subr.msk.bf16.mxu0 %vm3929_vm6, %v4148_v39 }
 0x447   : > { %v2742_v5 = vsel %vm2732_vm14, %v2741_v23, %v2716_v42  ;;  %v2692_v8 = vpop.permute.xlu1 %2691  ;;  %3932 = vmatpush1.bf16.msk.msra.mxu0 %vm3931_vm7, %v4148_v39 }
 0x448   : > { %v2743_v0 = vsel %vm2734_vm13, %v2742_v5, %v2720_v57  ;;  %v2735_v29 = vsel %vm2734_vm13, %v2733_v7, %v2692_v8  ;;  %3934 = vmatprep.subr.msk.bf16.mxu0 %vm3929_vm6, %v4148_v39 }
 0x449   : > { %v2744_v51 = vsel %vm2736_vm15, %v2743_v0, %v2724_v26 }
 0x44a   : > { %v2747_v21 = vmul.f32 1.442695, %v2744_v51 }
 0x44b   : > { %v2696_v52 = vpop.permute.xlu1 %2695 }
 0x44c   : > { %4035 = vpow2.f32 %v2747_v21  ;;  %v2737_v35 = vsel %vm2736_vm15, %v2735_v29, %v2696_v52 }
 0x44d   : > { %v2745_v30 = vmul.f32 1.442695, %v2737_v35 }
 0x44f   : > { %4037 = vpow2.f32 %v2745_v30 }
 0x454   : > { %v3251_v28 = vpop.permute.xlu0 %3250 }
 0x455   : > { %vm3252_vm4 = vcmp.lt.s32.totalorder %v2911_v46, %v3251_v28  ;;  %vm3253_vm10 = vcmp.lt.s32.totalorder %v2912_v36, %v3251_v28 }
 0x456   : > { %v4036_v43 = vpop.eup %4035 }
 0x457   : > { %2989 = vmatprep.mubr.f32.mxu1 %v4036_v43 }
 0x459   : > { %v4038_v44 = vpop.eup %4037 }
 0x45a   : > { %2990 = vmatmul.mubr.f32.vlgmr.msra.gmra.mrb[60].mxu1 %v4038_v44 }
 0x45c   : > { %v3256_v49 = vpop.permute.xlu1 %3255 }
 0x45d   : > { %vm3257_vm8 = vcmp.lt.s32.totalorder %v3247_v56, %v3256_v49  ;;  %vm3258_vm9 = vcmp.lt.s32.totalorder %v3248_v13, %v3256_v49 }
 0x45e   : > { %vm3259_vm11 = vmand %vm3252_vm4, %vm3257_vm8 }
 0x45f   : > { %vm3260_vm12 = vmand %vm3253_vm10, %vm3258_vm9 }
 0x52d   : > { %v3714_v55 = vpop.f32.mrb[60].mxu1 }
 0x52e   : > { %v3715_v6 = vpop.f32.mrb[61].mxu1 }
 0x52f   : > { %v3716_v16 = vadd.f32 %v3715_v6, %v3714_v55 }
 0x531   : > { %4039 = vrcp.f32 %v3716_v16 }
 0x53b   : > { %v4040_v48 = vpop.eup %4039 }
 0x53c   : > { %3599 = vmatmul.mubr.msk.f32.vlgmr.msra.gmra.mrb[68].mxu0 %vm998_vm2, %v4040_v48 }
 0x53d   : > { %3936 = vmatpush1.bf16.msk.msra.mxu0 %vm3931_vm7, %v4148_v39  ;;  %3240 = vmatprep.mubr.f32.mxu0 %v4138_v50 }
 0x540   : > { %3604 = vmatmul.mubr.msk.f32.vlgmr.msra.gmra.mrb[70].mxu0 %vm998_vm2, %v4800_v31 }
 0x60f   : > { %v3065_v58 = vpop.f32.mrb[68].mxu0 }
 0x610   : > { %v3261_v45 = vmul.f32 %v4038_v44, %v3065_v58  ;;  %v3067_v60 = vpop.f32.mrb[69].mxu0 }
 0x611   : > { %v3262_v39 = vmul.f32 %v4036_v43, %v3067_v60 }
 0x612   : > { %v3263_v50 = vsel %vm3259_vm11, %v3261_v45, 0.0 }
 0x613   : > { %3272 = vst [vmem:[%s599_s10] sm:$0xff] %v3263_v50  ;;  %v3264_v20 = vsel %vm3260_vm12, %v3262_v39, 0.0  ;;  %v3242_v31 = vpop.f32.mrb[70].mxu0 }
 0x614   : > { %3273 = vst [vmem:[%s599_s10 + $0x8] sm:$0xff] %v3264_v20  ;;  %v3265_v34 = vadd.f32 %v3242_v31, %v2737_v35  ;;  %v3244_v47 = vpop.f32.mrb[71].mxu0 }
 0x615   : > { %v3266_v2 = vadd.f32 %v3244_v47, %v2744_v51 }
 0x616   : > { %v3267_v3 = vmul.f32 %v3265_v34, %v3263_v50 }
 0x617   : > { %v3268_v12 = vmul.f32 %v3266_v2, %v3264_v20 }
 0x619   : > { %v3269_v24 = vadd.f32 %v3268_v12, %v3267_v3 }
 0x61b   : > { %3270 = vadd.xlane.f32.xlu1 %v3269_v24 }
 0x61c   : > { %4055 = shalt.err (!%p4052_p7)
}
 0x61d   : > { %s4056_s28 = scalar_lea.hbm %s4972_s15, 256  ;;  %s4060_s9 = scalar_lea.hbm %s5046_s5, 768 }
 0x61e   : > { %p4057_p9 = scmp.ne.s32.totalorder %s4972_s15, %s4056_s28  ;;  %p4061_p12 = scmp.lt.u32.totalorder %s4972_s15, %s5046_s5 }
 0x61f   : > { %p4062_p13 = scmp.lt.u32.totalorder %s4060_s9, %s4056_s28  ;;  %p4064_p1 = scmp.lt.u32.totalorder %s4056_s28, %s4972_s15 }
 0x620   : > { %p4058_p10 = pnand %p4057_p9, %p4228_p6 }
 0x621   : > { %p4063_p0 = por %p4062_p13, %p4061_p12 }
 0x622   : > { %p4059_p11 = pneg %p4058_p10 }
 0x623   : > { %p4065_p2 = por %p4064_p1, %p4063_p0 }
 0x625   : > { %p4066_p3 = pnand %p4065_p2, %p4059_p11 }
 0x627   : > { %4069 = shalt.err (!%p4066_p3)
}
 0x628   : > { %3938 = dma.vmem_to_hbm [thread:$0]  (%p4228_p6), %s3315_s12, 256, %s4972_s15, %s3287_s16   ;;  %vm3280_vm2 = vcmask 57344  }
 0x629   : > { %s3606_s13 = sshll.u32 %s4206_s22, 4  ;;  %s592_s14 = scalar_lea.vmem [#allocation4], %s4293_s6 }
 0x62a   : > { %s3300_s17 = sshll.u32 %s592_s14, 4  ;;  %s4998_s26 = scalar_lea.hbm %s5045_s4, %s3606_s13  ;;  %s5000_s17 = int_to_ptr.vmem [resolvable:$true] %s3300_s17 }
 0x62b   : > { %s3283_s28 = scalar_lea.sflag [#allocation5], %s4293_s6  ;;  %s4070_s12 = scalar_lea.vmem %s5000_s17, 16 }
 0x62c   : > { %p4071_p4 = scmp.ne.s32.totalorder %s5000_s17, %s4070_s12  ;;  %s4154_s22 = smov [#allocation4]  }
 0x62d   : > { %s4074_s15 = sshll.u32 %s4154_s22, 4  ;;  %s4075_s15 = int_to_ptr.vmem [resolvable:$false] %s4074_s15 }
 0x62e   : > { %p4072_p5 = pnand %p4071_p4, %p4228_p6  ;;  %s4076_s16 = scalar_lea.vmem %s4075_s15, 32 }
 0x62f   : > { %p4077_p9 = scmp.lt.s32.totalorder %s5000_s17, %s4075_s15  ;;  %p4078_p10 = scmp.lt.s32.totalorder %s4076_s16, %s4070_s12 }
 0x630   : > { %p4073_p7 = pneg %p4072_p5 }
 0x631   : > { %p4079_p11 = por %p4078_p10, %p4077_p9 }
 0x633   : > { %p4080_p12 = pnand %p4079_p11, %p4073_p7 }
 0x6a8   : > { %v3271_v41 = vpop.xlane.xlu1 %3270 }
 0x6a9   : > { %v3278_v59 = vrot.slane %v3271_v41, %v4568_v37 }
 0x6ab   : > { %3281 = vst.msk [vmem:[%s592_s14] sm:$0x1] %vm3280_vm2, %v3278_v59 }
 0x6ac   : > { %4083 = shalt.err (!%p4080_p12)
}
 0x6ad   : > { %s4084_s6 = scalar_lea.hbm %s4998_s26, 16  ;;  %s4088_s9 = scalar_lea.hbm %s5045_s4, 48 }
 0x6ae   : > { %p4085_p13 = scmp.ne.s32.totalorder %s4998_s26, %s4084_s6  ;;  %p4089_p2 = scmp.lt.u32.totalorder %s4998_s26, %s5045_s4 }
 0x6af   : > { %p4090_p3 = scmp.lt.u32.totalorder %s4088_s9, %s4084_s6  ;;  %p4092_p5 = scmp.lt.u32.totalorder %s4084_s6, %s4998_s26 }
 0x6b0   : > { %p4086_p0 = pnand %p4085_p13, %p4228_p6 }
 0x6b1   : > { %p4091_p4 = por %p4090_p3, %p4089_p2 }
 0x6b2   : > { %p4087_p1 = pneg %p4086_p0 }
 0x6b3   : > { %p4093_p7 = por %p4092_p5, %p4091_p4 }
 0x6b5   : > { %p4094_p9 = pnand %p4093_p7, %p4087_p1 }
 0x6b7   : > { %4097 = shalt.err (!%p4094_p9)
}
 0x6b8   : > { %3937 = dma.vmem_to_hbm [thread:$0]  (%p4228_p6), %s5000_s17, 16, %s4998_s26, %s3283_s28  }
 0x6b9 PF: > { %p3948_p10 = scmp.ge.s32.totalorder %s4136_s21, 2  ;;  %s3326_s13 = sand.u32 1, %s4124_s18  }
 0x6ba   : > { %s3327_s14 = scalar_lea.sflag [#allocation5], %s3326_s13 }
 0x6bb   : > { %p3942_p11 = pnand %p3948_p10, %p4232_p8 }
 0x6bd   : > { %4115 = dma.done.wait (!%p3942_p11), %s3327_s14, 16  }
 0x6be   : > { %4117 = vsyncadd (!%p3942_p11), %s3327_s14, 4294967280  ;;  %s3335_s23 = scalar_lea.sflag [#allocation7], %s3326_s13 }
 0x6bf   : > { %4119 = dma.done.wait (!%p3942_p11), %s3335_s23, 256  }
 0x6c0   : > { %4121 = vsyncadd (!%p3942_p11), %s3335_s23, 4294967040  ;;  %p19_p6 = scmp.ge.s32.totalorder %s4210_s24, 5   ;;  %s5078_s18 = smov %s4128_s19 }
 0x6c1   : > { %s5079_s19 = smov %s4132_s20  ;;  %s5080_s20 = smov %s4222_s27 }
 0x6c2   : > { %s5081_s21 = smov %s4210_s24  ;;  %21 = sbr.rel (!%p19_p6) target bundleno = 5 (0x5), region = 186 }
 0x6c9   :  { %3340 = vsyncpa [#allocation5], 1 }
 0x6ca   :  { %3342 = vsyncpa [#allocation5 + $0x1], 1 }
 0x6cb   :  { %3343 = vsyncpa [#allocation7], 1 }
 0x6cc   :  { %3345 = vsyncpa [#allocation7 + $0x1], 1 }

</bundles_post_ra>
